<compile_context>
chip_gen: v6e
topology: v6e:2x2x1
jax: 0.10.0
libtpu: 0.0.40
codegen_flags: <defaults>
</compile_context>

<pallas_src>
import functools

import jax
import jax.numpy as jnp
from jax import lax
from jax.experimental import pallas as pl
from jax.experimental.pallas import tpu as pltpu

n_embd = 64          # C
block_size = 256     # max T supported by the module's tril buffer
dropout = 0.0        # p = 0.0 -> identity


def head_kernel(x_ref, wqkv_ref, o_ref, *, softmax_dtype):
    """Causal single-head attention for a block of Bblk batch elements.

    x_ref:    (Bblk, T, C)   bf16 input activations
    wqkv_ref: (C, 3H)        bf16 fused [key | query | value] weights
    o_ref:    (T, Bblk*H)    lane-dense output slab; columns b*H:(b+1)*H hold
                             the output of batch element b of this block
    """
    Bblk, T, C = x_ref.shape
    H = o_ref.shape[-1] // Bblk
    # NOTE: reference scales by C ** -0.5 (n_embd), not head_size ** -0.5.
    scale = C ** (-0.5)

    # ---- QKV projection: all Bblk*T rows on the MXU ------------------------
    # Three dots against static slices of the weight ref (cheap) instead of
    # slicing a 3H-lane-wide fused result at H-lane offsets (forces relayout).
    x = x_ref[...].reshape(Bblk * T, C)
    k = jnp.dot(x, wqkv_ref[:, 0 * H:1 * H], preferred_element_type=jnp.float32)
    q = jnp.dot(x, wqkv_ref[:, 1 * H:2 * H], preferred_element_type=jnp.float32)
    v = jnp.dot(x, wqkv_ref[:, 2 * H:3 * H], preferred_element_type=jnp.float32)

    k = k.reshape(Bblk, T, H).astype(jnp.bfloat16)
    # scale folded into q before the score matmul (exact: 1/8 is a power of 2)
    q = (q.reshape(Bblk, T, H) * scale).astype(jnp.bfloat16)
    v = v.reshape(Bblk, T, H).astype(jnp.bfloat16)

    # ---- scores + causal mask (generated in-kernel, no HBM bias input) -----
    wei = jnp.einsum("bqd,bkd->bqk", q, k,
                     preferred_element_type=jnp.float32)          # (Bblk,T,T) f32
    row = lax.broadcasted_iota(jnp.int32, (T, T), 0)
    col = lax.broadcasted_iota(jnp.int32, (T, T), 1)
    wei = jnp.where((col <= row)[None, :, :], wei, -1e30)

    # ---- un-normalized softmax; exp in bf16 on v6e/v7x, f32 elsewhere ------
    m = jnp.max(wei, axis=-1, keepdims=True)
    p = jnp.exp((wei - m).astype(softmax_dtype))
    row_sum = jnp.sum(p, axis=-1, keepdims=True, dtype=jnp.float32)  # (Bblk,T,1)

    # TODO(synk): dropout with p>0 would need pltpu.prng_* masking; dropout=0.0 here -> identity.

    # ---- PV matmul, then normalize the (T,H) result (not the (T,T) probs) --
    out = jnp.einsum("bqk,bkd->bqd", p.astype(jnp.bfloat16), v,
                     preferred_element_type=jnp.float32)          # (Bblk,T,H) f32
    out = out * pl.reciprocal(row_sum, approx=True)
    out = out.astype(o_ref.dtype)

    # ---- lane-dense pack: batch along lanes -> (T, Bblk*H) -----------------
    # Static VMEM-local lane slices; the HBM writeback of o_ref is one dense
    # (T, Bblk*H) tile.
    for b in range(Bblk):
        o_ref[:, b * H:(b + 1) * H] = out[b]


def _tpu_kind():
    try:
        return jax.devices()[0].device_kind.lower()
    except Exception:
        return ""


def _default_softmax_dtype():
    kind = _tpu_kind()
    # v6e / v7x VPU & EUP have bf16 paths; keep f32 softmax on older chips.
    if "v6" in kind or "v7" in kind:
        return jnp.bfloat16
    return jnp.float32


def _choose_bblk(B, *, cap=16):
    """Largest divisor of B <= cap.  On v7x (2 TensorCores/chip) keep >= 2
    grid steps so dimension_semantics=('parallel',) has work for both cores;
    single-TC chips (v5e/v6e) just take the biggest block."""
    divisors = [d for d in range(1, min(cap, B) + 1) if B % d == 0]
    if "v7" in _tpu_kind():
        two_step = [d for d in divisors if B // d >= 2]
        if two_step:
            return max(two_step)
    return max(divisors) if divisors else B


def head_forward(x, wk, wq, wv, *, bblk=None, softmax_dtype=None):
    """x: (B, T, C) ; wk/wq/wv: (C, H) ; returns (B, T, H) in x.dtype."""
    B, T, C = x.shape
    H = wk.shape[1]

    if bblk is None:
        bblk = _choose_bblk(B)
    assert B % bblk == 0
    nb = B // bblk
    if softmax_dtype is None:
        softmax_dtype = _default_softmax_dtype()

    # bf16 in HBM: the kernel computes every matmul in bf16 anyway, so f32
    # inputs would just double the DMA bytes / VMEM footprint.
    x_bf16 = x.astype(jnp.bfloat16)
    wqkv = jnp.concatenate([wk, wq, wv], axis=1).astype(jnp.bfloat16)   # (C, 3H)

    kernel = functools.partial(head_kernel, softmax_dtype=softmax_dtype)

    out_slab = pl.pallas_call(
        kernel,
        out_shape=jax.ShapeDtypeStruct((nb, T, bblk * H), x.dtype),
        grid=(nb,),
        in_specs=[
            pl.BlockSpec((bblk, T, C), lambda b: (b, 0, 0)),
            pl.BlockSpec((C, 3 * H), lambda b: (0, 0)),
        ],
        out_specs=pl.BlockSpec((None, T, bblk * H), lambda b: (b, 0, 0)),
        compiler_params=pltpu.CompilerParams(dimension_semantics=("parallel",)),
    )(x_bf16, wqkv)

    # Undo the lane-dense packing: (nb, T, bblk*H) -> (B, T, H).
    out = out_slab.reshape(nb, T, bblk, H).transpose(0, 2, 1, 3).reshape(B, T, H)
    return out


def head_reference(x, wk, wq, wv):
    """Pure-JAX f32 reference mirroring the PyTorch forward."""
    B, T, C = x.shape
    k = x @ wk
    q = x @ wq
    v = x @ wv
    wei = jnp.einsum("btd,bsd->bts", q, k) * (C ** -0.5)
    mask = jnp.tril(jnp.ones((T, T), dtype=bool))
    wei = jnp.where(mask[None, :, :], wei, -jnp.inf)
    wei = jax.nn.softmax(wei, axis=-1)
    return wei @ v


if __name__ == "__main__":
    B, T, H = 8, 32, 16          # head_size = 16, C = n_embd = 64
    C = n_embd

    key = jax.random.PRNGKey(0)
    kx, kk, kq, kv = jax.random.split(key, 4)

    x = jax.random.normal(kx, (B, T, C), dtype=jnp.float32)
    # nn.Linear(n_embd, head_size, bias=False): weight (H, C); forward does
    # x @ W.T.  We store the already-transposed (C, H) matrices.
    wk = jax.random.normal(kk, (C, H), dtype=jnp.float32) * (C ** -0.5)
    wq = jax.random.normal(kq, (C, H), dtype=jnp.float32) * (C ** -0.5)
    wv = jax.random.normal(kv, (C, H), dtype=jnp.float32) * (C ** -0.5)

    out = head_forward(x, wk, wq, wv)
    out = jax.block_until_ready(out)

    ref = head_reference(x, wk, wq, wv)
    assert out.shape == (B, T, H)
    # bf16 MXU operands, bf16 exp (on v6e/v7x) + approx reciprocal -> relaxed
    # tolerance vs the f32 reference.
    max_diff = float(jnp.max(jnp.abs(out - ref)))
    assert jnp.allclose(out, ref, atol=5e-2, rtol=5e-2), (
        f"mismatch vs reference; max abs diff = {max_diff}")

    print("KERNEL_OK")
</pallas_src>

<mosaic_0001>
module attributes {stable_mosaic.version = 11 : i64} {
  func.func @head_kernel(%arg0: i32, %arg1: memref<8x32x64xbf16, #tpu.memory_space<vmem>>, %arg2: memref<64x48xbf16, #tpu.memory_space<vmem>>, %arg3: memref<1x32x128xf32, #tpu.memory_space<vmem>>) attributes {dimension_semantics = [#tpu.dimension_semantics<parallel>], iteration_bounds = array<i64: 1>, scalar_prefetch = 0 : i64, scratch_operands = 0 : i64, tpu.core_type = #tpu.core_type<tc>, window_params = [{transform_indices = @transform_0, window_bounds = array<i64: 8, 32, 64>}, {pipeline_mode = #tpu.pipeline_mode<synchronous>, transform_indices = @transform_1, window_bounds = array<i64: 64, 48>}, {transform_indices = @transform_2, window_bounds = array<i64: 1, 32, 128>}]} {
    %c0 = arith.constant 0 : index
    %c0_0 = arith.constant 0 : index
    %c0_1 = arith.constant 0 : index
    %0 = vector.load %arg1[%c0, %c0_0, %c0_1] : memref<8x32x64xbf16, #tpu.memory_space<vmem>>, vector<8x32x64xbf16>
    %1 = vector.shape_cast %0 : vector<8x32x64xbf16> to vector<256x64xbf16>
    %c0_2 = arith.constant 0 : index
    %c0_3 = arith.constant 0 : index
    %2 = vector.load %arg2[%c0_2, %c0_3] : memref<64x48xbf16, #tpu.memory_space<vmem>>, vector<64x16xbf16>
    %cst = arith.constant dense<0.000000e+00> : vector<256x16xf32>
    %3 = tpu.matmul %1, %2, %cst {dimension_numbers = #tpu.dot_dimension_numbers<[1], [0], [0], [1], [0, 0, 1, 1], [], []>} : vector<256x64xbf16>, vector<64x16xbf16>, vector<256x16xf32> -> vector<256x16xf32>
    %c0_4 = arith.constant 0 : index
    %c16 = arith.constant 16 : index
    %4 = vector.load %arg2[%c0_4, %c16] : memref<64x48xbf16, #tpu.memory_space<vmem>>, vector<64x16xbf16>
    %cst_5 = arith.constant dense<0.000000e+00> : vector<256x16xf32>
    %5 = tpu.matmul %1, %4, %cst_5 {dimension_numbers = #tpu.dot_dimension_numbers<[1], [0], [0], [1], [0, 0, 1, 1], [], []>} : vector<256x64xbf16>, vector<64x16xbf16>, vector<256x16xf32> -> vector<256x16xf32>
    %c0_6 = arith.constant 0 : index
    %c32 = arith.constant 32 : index
    %6 = vector.load %arg2[%c0_6, %c32] : memref<64x48xbf16, #tpu.memory_space<vmem>>, vector<64x16xbf16>
    %cst_7 = arith.constant dense<0.000000e+00> : vector<256x16xf32>
    %7 = tpu.matmul %1, %6, %cst_7 {dimension_numbers = #tpu.dot_dimension_numbers<[1], [0], [0], [1], [0, 0, 1, 1], [], []>} : vector<256x64xbf16>, vector<64x16xbf16>, vector<256x16xf32> -> vector<256x16xf32>
    %8 = vector.shape_cast %3 : vector<256x16xf32> to vector<8x32x16xf32>
    %9 = arith.truncf %8 : vector<8x32x16xf32> to vector<8x32x16xbf16>
    %10 = vector.shape_cast %5 : vector<256x16xf32> to vector<8x32x16xf32>
    %cst_8 = arith.constant 1.250000e-01 : f32
    %11 = vector.broadcast %cst_8 : f32 to vector<8x32x16xf32>
    %12 = arith.mulf %10, %11 : vector<8x32x16xf32>
    %13 = arith.truncf %12 : vector<8x32x16xf32> to vector<8x32x16xbf16>
    %14 = vector.shape_cast %7 : vector<256x16xf32> to vector<8x32x16xf32>
    %15 = arith.truncf %14 : vector<8x32x16xf32> to vector<8x32x16xbf16>
    "tpu.trace_start"() <{level = 10 : i32, message = "bqd,bkd->bqk"}> : () -> ()
    %cst_9 = arith.constant dense<0.000000e+00> : vector<8x32x32xf32>
    %16 = tpu.matmul %13, %9, %cst_9 {dimension_numbers = #tpu.dot_dimension_numbers<[2], [2], [1], [1], [0, 0, 0, 1, 1, 1], [0], [0]>} : vector<8x32x16xbf16>, vector<8x32x16xbf16>, vector<8x32x32xf32> -> vector<8x32x32xf32>
    "tpu.trace_stop"() : () -> ()
    %17 = tpu.iota {dimensions = array<i32: 0>} : vector<32x32xi32>
    %18 = tpu.iota {dimensions = array<i32: 1>} : vector<32x32xi32>
    %19 = arith.cmpi sle, %18, %17 : vector<32x32xi32>
    %20 = vector.shape_cast %19 : vector<32x32xi1> to vector<1x32x32xi1>
    %cst_10 = arith.constant -1.000000e+30 : f32
    %21 = vector.shape_cast %20 : vector<1x32x32xi1> to vector<1x32x32xi1>
    %22 = vector.broadcast %21 : vector<1x32x32xi1> to vector<8x32x32xi1>
    %23 = vector.broadcast %cst_10 : f32 to vector<8x32x32xf32>
    %24 = arith.select %22, %16, %23 : vector<8x32x32xi1>, vector<8x32x32xf32>
    %cst_11 = arith.constant dense<0xFF800000> : vector<8x32xf32>
    %25 = vector.multi_reduction <maximumf>, %24, %cst_11 [2] : vector<8x32x32xf32> to vector<8x32xf32>
    %26 = vector.shape_cast %25 : vector<8x32xf32> to vector<8x32x1xf32>
    %27 = vector.broadcast %26 : vector<8x32x1xf32> to vector<8x32x32xf32>
    %28 = arith.subf %24, %27 : vector<8x32x32xf32>
    %29 = math.exp %28 : vector<8x32x32xf32>
    %cst_12 = arith.constant dense<0.000000e+00> : vector<8x32xf32>
    %30 = vector.multi_reduction <add>, %29, %cst_12 [2] : vector<8x32x32xf32> to vector<8x32xf32>
    %31 = vector.shape_cast %30 : vector<8x32xf32> to vector<8x32x1xf32>
    %32 = arith.truncf %29 : vector<8x32x32xf32> to vector<8x32x32xbf16>
    "tpu.trace_start"() <{level = 10 : i32, message = "bqk,bkd->bqd"}> : () -> ()
    %cst_13 = arith.constant dense<0.000000e+00> : vector<8x32x16xf32>
    %33 = tpu.matmul %32, %15, %cst_13 {dimension_numbers = #tpu.dot_dimension_numbers<[2], [1], [1], [2], [0, 0, 0, 1, 1, 2], [0], [0]>} : vector<8x32x32xbf16>, vector<8x32x16xbf16>, vector<8x32x16xf32> -> vector<8x32x16xf32>
    "tpu.trace_stop"() : () -> ()
    %34 = tpu.reciprocal %31 {approx = true} : vector<8x32x1xf32> -> vector<8x32x1xf32>
    %35 = vector.broadcast %34 : vector<8x32x1xf32> to vector<8x32x16xf32>
    %36 = arith.mulf %33, %35 : vector<8x32x16xf32>
    %37 = vector.extract_strided_slice %36 {offsets = [0, 0, 0], sizes = [1, 32, 16], strides = [1, 1, 1]} : vector<8x32x16xf32> to vector<1x32x16xf32>
    %38 = vector.shape_cast %37 : vector<1x32x16xf32> to vector<32x16xf32>
    %c0_14 = arith.constant 0 : index
    %c0_15 = arith.constant 0 : index
    %c0_16 = arith.constant 0 : index
    %39 = vector.load %arg3[%c0_14, %c0_15, %c0_16] : memref<1x32x128xf32, #tpu.memory_space<vmem>>, vector<1x32x16xf32>
    %40 = vector.shape_cast %39 : vector<1x32x16xf32> to vector<32x16xf32>
    %41 = vector.shape_cast %38 : vector<32x16xf32> to vector<1x32x16xf32>
    tpu.vector_store %arg3[%c0_14, %c0_15, %c0_16], %41 {strides = array<i32>} : memref<1x32x128xf32, #tpu.memory_space<vmem>>, vector<1x32x16xf32>,
    %42 = vector.extract_strided_slice %36 {offsets = [1, 0, 0], sizes = [1, 32, 16], strides = [1, 1, 1]} : vector<8x32x16xf32> to vector<1x32x16xf32>
    %43 = vector.shape_cast %42 : vector<1x32x16xf32> to vector<32x16xf32>
    %c0_17 = arith.constant 0 : index
    %c0_18 = arith.constant 0 : index
    %c16_19 = arith.constant 16 : index
    %44 = vector.load %arg3[%c0_17, %c0_18, %c16_19] : memref<1x32x128xf32, #tpu.memory_space<vmem>>, vector<1x32x16xf32>
    %45 = vector.shape_cast %44 : vector<1x32x16xf32> to vector<32x16xf32>
    %46 = vector.shape_cast %43 : vector<32x16xf32> to vector<1x32x16xf32>
    tpu.vector_store %arg3[%c0_17, %c0_18, %c16_19], %46 {strides = array<i32>} : memref<1x32x128xf32, #tpu.memory_space<vmem>>, vector<1x32x16xf32>,
    %47 = vector.extract_strided_slice %36 {offsets = [2, 0, 0], sizes = [1, 32, 16], strides = [1, 1, 1]} : vector<8x32x16xf32> to vector<1x32x16xf32>
    %48 = vector.shape_cast %47 : vector<1x32x16xf32> to vector<32x16xf32>
    %c0_20 = arith.constant 0 : index
    %c0_21 = arith.constant 0 : index
    %c32_22 = arith.constant 32 : index
    %49 = vector.load %arg3[%c0_20, %c0_21, %c32_22] : memref<1x32x128xf32, #tpu.memory_space<vmem>>, vector<1x32x16xf32>
    %50 = vector.shape_cast %49 : vector<1x32x16xf32> to vector<32x16xf32>
    %51 = vector.shape_cast %48 : vector<32x16xf32> to vector<1x32x16xf32>
    tpu.vector_store %arg3[%c0_20, %c0_21, %c32_22], %51 {strides = array<i32>} : memref<1x32x128xf32, #tpu.memory_space<vmem>>, vector<1x32x16xf32>,
    %52 = vector.extract_strided_slice %36 {offsets = [3, 0, 0], sizes = [1, 32, 16], strides = [1, 1, 1]} : vector<8x32x16xf32> to vector<1x32x16xf32>
    %53 = vector.shape_cast %52 : vector<1x32x16xf32> to vector<32x16xf32>
    %c0_23 = arith.constant 0 : index
    %c0_24 = arith.constant 0 : index
    %c48 = arith.constant 48 : index
    %54 = vector.load %arg3[%c0_23, %c0_24, %c48] : memref<1x32x128xf32, #tpu.memory_space<vmem>>, vector<1x32x16xf32>
    %55 = vector.shape_cast %54 : vector<1x32x16xf32> to vector<32x16xf32>
    %56 = vector.shape_cast %53 : vector<32x16xf32> to vector<1x32x16xf32>
    tpu.vector_store %arg3[%c0_23, %c0_24, %c48], %56 {strides = array<i32>} : memref<1x32x128xf32, #tpu.memory_space<vmem>>, vector<1x32x16xf32>,
    %57 = vector.extract_strided_slice %36 {offsets = [4, 0, 0], sizes = [1, 32, 16], strides = [1, 1, 1]} : vector<8x32x16xf32> to vector<1x32x16xf32>
    %58 = vector.shape_cast %57 : vector<1x32x16xf32> to vector<32x16xf32>
    %c0_25 = arith.constant 0 : index
    %c0_26 = arith.constant 0 : index
    %c64 = arith.constant 64 : index
    %59 = vector.load %arg3[%c0_25, %c0_26, %c64] : memref<1x32x128xf32, #tpu.memory_space<vmem>>, vector<1x32x16xf32>
    %60 = vector.shape_cast %59 : vector<1x32x16xf32> to vector<32x16xf32>
    %61 = vector.shape_cast %58 : vector<32x16xf32> to vector<1x32x16xf32>
    tpu.vector_store %arg3[%c0_25, %c0_26, %c64], %61 {strides = array<i32>} : memref<1x32x128xf32, #tpu.memory_space<vmem>>, vector<1x32x16xf32>,
    %62 = vector.extract_strided_slice %36 {offsets = [5, 0, 0], sizes = [1, 32, 16], strides = [1, 1, 1]} : vector<8x32x16xf32> to vector<1x32x16xf32>
    %63 = vector.shape_cast %62 : vector<1x32x16xf32> to vector<32x16xf32>
    %c0_27 = arith.constant 0 : index
    %c0_28 = arith.constant 0 : index
    %c80 = arith.constant 80 : index
    %64 = vector.load %arg3[%c0_27, %c0_28, %c80] : memref<1x32x128xf32, #tpu.memory_space<vmem>>, vector<1x32x16xf32>
    %65 = vector.shape_cast %64 : vector<1x32x16xf32> to vector<32x16xf32>
    %66 = vector.shape_cast %63 : vector<32x16xf32> to vector<1x32x16xf32>
    tpu.vector_store %arg3[%c0_27, %c0_28, %c80], %66 {strides = array<i32>} : memref<1x32x128xf32, #tpu.memory_space<vmem>>, vector<1x32x16xf32>,
    %67 = vector.extract_strided_slice %36 {offsets = [6, 0, 0], sizes = [1, 32, 16], strides = [1, 1, 1]} : vector<8x32x16xf32> to vector<1x32x16xf32>
    %68 = vector.shape_cast %67 : vector<1x32x16xf32> to vector<32x16xf32>
    %c0_29 = arith.constant 0 : index
    %c0_30 = arith.constant 0 : index
    %c96 = arith.constant 96 : index
    %69 = vector.load %arg3[%c0_29, %c0_30, %c96] : memref<1x32x128xf32, #tpu.memory_space<vmem>>, vector<1x32x16xf32>
    %70 = vector.shape_cast %69 : vector<1x32x16xf32> to vector<32x16xf32>
    %71 = vector.shape_cast %68 : vector<32x16xf32> to vector<1x32x16xf32>
    tpu.vector_store %arg3[%c0_29, %c0_30, %c96], %71 {strides = array<i32>} : memref<1x32x128xf32, #tpu.memory_space<vmem>>, vector<1x32x16xf32>,
    %72 = vector.extract_strided_slice %36 {offsets = [7, 0, 0], sizes = [1, 32, 16], strides = [1, 1, 1]} : vector<8x32x16xf32> to vector<1x32x16xf32>
    %73 = vector.shape_cast %72 : vector<1x32x16xf32> to vector<32x16xf32>
    %c0_31 = arith.constant 0 : index
    %c0_32 = arith.constant 0 : index
    %c112 = arith.constant 112 : index
    %74 = vector.load %arg3[%c0_31, %c0_32, %c112] : memref<1x32x128xf32, #tpu.memory_space<vmem>>, vector<1x32x16xf32>
    %75 = vector.shape_cast %74 : vector<1x32x16xf32> to vector<32x16xf32>
    %76 = vector.shape_cast %73 : vector<32x16xf32> to vector<1x32x16xf32>
    tpu.vector_store %arg3[%c0_31, %c0_32, %c112], %76 {strides = array<i32>} : memref<1x32x128xf32, #tpu.memory_space<vmem>>, vector<1x32x16xf32>,
    return
  }
  func.func @transform_0(%arg0: i32) -> (i32, i32, i32) {
    %c0_i32 = arith.constant 0 : i32
    %c0_i32_0 = arith.constant 0 : i32
    %c0_i32_1 = arith.constant 0 : i32
    return %arg0, %c0_i32, %c0_i32_0 : i32, i32, i32
  }
  func.func @transform_1(%arg0: i32) -> (i32, i32) {
    %c0_i32 = arith.constant 0 : i32
    %c0_i32_0 = arith.constant 0 : i32
    %c0_i32_1 = arith.constant 0 : i32
    return %c0_i32, %c0_i32_0 : i32, i32
  }
  func.func @transform_2(%arg0: i32) -> (i32, i32, i32) {
    %c0_i32 = arith.constant 0 : i32
    %c0_i32_0 = arith.constant 0 : i32
    %c0_i32_1 = arith.constant 0 : i32
    return %arg0, %c0_i32, %c0_i32_0 : i32, i32, i32
  }
}

</mosaic_0001>

<bundles_post_ra>
// kernel: tpu_custom_call.1
= control target key start
LH: loop header
LB: loop body
LE: loop exit
PB: predicated region body
PF: predicated region fallthrough
CT: control target
= control target key end

     0   :  { %7 = vsyncpa [#allocation3], 0  ;;  %s3699_s0 = inlined_call_operand.hbm [shape: bf16[8,32,64], index: 0, kind: input, shape index: {}]   ;;  %s3700_s1 = inlined_call_operand.vmem [shape: bf16[64,48], index: 1, kind: input, shape index: {}]   ;;  %s3701_s2 = inlined_call_operand.hbm [shape: f32[1,32,128], index: 2, kind: output, shape index: {}]  }
   0x1   :  { %8 = vsyncpa [#allocation4], 0  ;;  %s3016_s9 = smov [#allocation2]  }
   0x2   :  { %s14_s10 = sshll.u32 %s3016_s9, 4  ;;  %s15_s10 = int_to_ptr.vmem [resolvable:$true] %s14_s10 }
   0x3   :  { %s2980_s11 = scalar_lea.vmem %s15_s10, 2048  ;;  %p2985_p1 = scmp.lt.s32.totalorder %s15_s10, %s15_s10 }
   0x4   :  { %p2981_p0 = scmp.ne.s32.totalorder %s15_s10, %s2980_s11  ;;  %p2986_p2 = scmp.lt.s32.totalorder %s2980_s11, %s2980_s11 }
   0x6   :  { %p2987_p3 = por %p2986_p2, %p2985_p1 }
   0x8   :  { %p2988_p4 = pnand %p2987_p3, %p2981_p0 }
   0xa   :  { %2991 = shalt.err (!%p2988_p4)
}
   0xb   :  { %s3017_s12 = smov 64   ;;  %s3018_s13 = smov 4  }
   0xc   :  { %20 = dma.hbm_to_vmem [thread:$0]  %s3699_s0, 2048, %s15_s10, [#allocation3], %s3017_s12, %s3017_s12, %s3018_s13  }
   0xd   :  { %3012 = dma.done.wait [#allocation3], 2048  }
   0xe   :  { %3013 = vsyncadd [#allocation3], 4294965248  ;;  %v2824_v0 = vld [vmem:[%s3700_s1 + $0x18] sm:$0xff]   ;;  %v2825_v1 = vld [vmem:[%s3700_s1 + $0x10] sm:$0xff]   ;;  %s3019_s20 = smov 112   ;;  %vm171_vm0 = vcmask 523264  }
   0xf   :  { %387 = vrot.lane.b32.xlu0 %v2824_v0, %s3019_s20  ;;  %v2826_v2 = vld [vmem:[%s3700_s1 + $0x8] sm:$0xff]   ;;  %2548 = vmatprep.subr.bf16.mxu0 %v2824_v0  ;;  %v2827_v3 = vld [vmem:[%s3700_s1] sm:$0xff]   ;;  %s3020_s24 = smov 96   ;;  %v2830_v6 = vld [vmem:[#allocation2 + $0x10] sm:$0xff]   ;;  %vm807_vm1 = vcmask 130048   ;;  %vm1347_vm3 = vcmask 261120  }
  0x10   :  { %2549 = vmatpush3.bf16.msra.mxu0 %v2824_v0  ;;  %383 = vrot.lane.b32.xlu1 %v2826_v2, %s3019_s20  ;;  %v2828_v4 = vld [vmem:[#allocation2] sm:$0xff]   ;;  %v2829_v5 = vld [vmem:[#allocation2 + $0x8] sm:$0xff]   ;;  %v2831_v7 = vld [vmem:[#allocation2 + $0x18] sm:$0xff]   ;;  %s3021_s1 = smov 16   ;;  %s3022_s25 = smov 32   ;;  %vm2176_vm7 = vcmask 261248  }
  0x11   :  { %2550 = vmatprep.subr.bf16.mxu0 %v2825_v1  ;;  %2556 = vmatprep.mubr.msk.bf16.mxu0 %vm171_vm0, %v2828_v4  ;;  %v2832_v8 = vld [vmem:[#allocation2 + $0x20] sm:$0xff]   ;;  %v2833_v9 = vld [vmem:[#allocation2 + $0x28] sm:$0xff]   ;;  %v2834_v10 = vld [vmem:[#allocation2 + $0x30] sm:$0xff]   ;;  %s3023_s26 = smov 48   ;;  %s3024_s27 = smov 80   ;;  %vm2197_vm8 = vcmask 392448  }
  0x12   :  { %2596 = vmatprep.mubr.msk.bf16.mxu1 %vm171_vm0, %v2828_v4  ;;  %v2835_v11 = vld [vmem:[#allocation2 + $0x38] sm:$0xff]   ;;  %v2836_v12 = vld [vmem:[#allocation2 + $0x40] sm:$0xff]   ;;  %v2837_v13 = vld [vmem:[#allocation2 + $0x48] sm:$0xff]   ;;  %vm2218_vm9 = vcmask 523648   ;;  %vm2239_vm10 = vcmask 654848   ;;  %vm2260_vm11 = vcmask 786048  }
  0x13   :  { %385 = vrot.lane.b32.xlu0 %v2825_v1, %s3019_s20  ;;  %v2838_v14 = vld [vmem:[#allocation2 + $0x50] sm:$0xff]   ;;  %v2839_v15 = vld [vmem:[#allocation2 + $0x58] sm:$0xff]   ;;  %v2840_v16 = vld [vmem:[#allocation2 + $0x60] sm:$0xff]   ;;  %vm2281_vm12 = vcmask 917248   ;;  %vm2302_vm13 = vcmask 1048448   ;;  %s3025_s28 = smov [#allocation5]  }
  0x14   :  { %2551 = vmatpush3.bf16.msra.mxu0 %v2825_v1  ;;  %381 = vrot.lane.b32.xlu1 %v2827_v3, %s3019_s20  ;;  %v2841_v17 = vld [vmem:[#allocation2 + $0x68] sm:$0xff]   ;;  %v2842_v18 = vld [vmem:[#allocation2 + $0x70] sm:$0xff]   ;;  %v2843_v19 = vld [vmem:[#allocation2 + $0x78] sm:$0xff]   ;;  %s2312_s29 = sshll.u32 %s3025_s28, 4  ;;  %s2313_s29 = int_to_ptr.vmem [resolvable:$true] %s2312_s29 }
  0x15   :  { %2552 = vmatprep.subr.bf16.mxu0 %v2826_v2  ;;  %s2992_s30 = scalar_lea.vmem %s2313_s29, 512  ;;  %p2997_p6 = scmp.lt.s32.totalorder %s2313_s29, %s2313_s29 }
  0x16   :  { %p2993_p5 = scmp.ne.s32.totalorder %s2313_s29, %s2992_s30  ;;  %p2998_p7 = scmp.lt.s32.totalorder %s2992_s30, %s2992_s30 }
  0x17   :  { %560 = vrot.lane.b32.xlu0 %v2824_v0, %s3020_s24 }
  0x18   :  { %2553 = vmatpush3.bf16.msra.mxu0 %v2826_v2  ;;  %558 = vrot.lane.b32.xlu1 %v2825_v1, %s3020_s24  ;;  %p2999_p8 = por %p2998_p7, %p2997_p6 }
  0x19   :  { %2554 = vmatprep.subr.bf16.mxu0 %v2827_v3 }
  0x1a   :  { %p3000_p9 = pnand %p2999_p8, %p2993_p5 }
  0x1b   :  { %556 = vrot.lane.b32.xlu0 %v2826_v2, %s3020_s24 }
  0x1c   :  { %2555 = vmatpush3.bf16.msra.mxu0 %v2827_v3  ;;  %554 = vrot.lane.b32.xlu1 %v2827_v3, %s3020_s24 }
  0x1f   :  { %2557 = vmatmul.mubr.msk.bf16.vlgmr.msra.gmra.mxu0 %vm171_vm0, %v2829_v5 }
  0x20   :  { %2560 = vmatprep.mubr.msk.bf16.mxu0 %vm171_vm0, %v2830_v6 }
  0x27   :  { %2561 = vmatmul.mubr.msk.bf16.gmra.mxu0 %vm171_vm0, %v2831_v7 }
  0x28   :  { %2564 = vmatprep.mubr.msk.bf16.mxu0 %vm171_vm0, %v2832_v8 }
  0x2f   :  { %2565 = vmatmul.mubr.msk.bf16.gmra.mxu0 %vm171_vm0, %v2833_v9 }
  0x30   :  { %2568 = vmatprep.mubr.msk.bf16.mxu0 %vm171_vm0, %v2834_v10 }
  0x37   :  { %2569 = vmatmul.mubr.msk.bf16.gmra.mxu0 %vm171_vm0, %v2835_v11 }
  0x38   :  { %2572 = vmatprep.mubr.msk.bf16.mxu0 %vm171_vm0, %v2836_v12 }
  0x3f   :  { %2573 = vmatmul.mubr.msk.bf16.gmra.mxu0 %vm171_vm0, %v2837_v13 }
  0x40   :  { %2576 = vmatprep.mubr.msk.bf16.mxu0 %vm171_vm0, %v2838_v14 }
  0x47   :  { %2577 = vmatmul.mubr.msk.bf16.gmra.mxu0 %vm171_vm0, %v2839_v15 }
  0x48   :  { %2580 = vmatprep.mubr.msk.bf16.mxu0 %vm171_vm0, %v2840_v16 }
  0x4f   :  { %2581 = vmatmul.mubr.msk.bf16.gmra.mxu0 %vm171_vm0, %v2841_v17 }
  0x50   :  { %2584 = vmatprep.mubr.msk.bf16.mxu0 %vm171_vm0, %v2842_v18 }
  0x57   :  { %2585 = vmatmul.mubr.msk.bf16.gmra.mxu0 %vm171_vm0, %v2843_v19 }
  0x58   :  { %2636 = vmatprep.mubr.msk.bf16.mxu0 %vm171_vm0, %v2828_v4 }
  0x81   :  { %v388_v20 = vpop.permute.xlu0 %387 }
  0x82   :  { %2588 = vmatprep.subr.bf16.mxu1 %v388_v20  ;;  %v384_v21 = vpop.permute.xlu1 %383 }
  0x83   :  { %2589 = vmatpush3.bf16.msra.mxu1 %v388_v20 }
  0x85   :  { %v386_v22 = vpop.permute.xlu0 %385 }
  0x86   :  { %2590 = vmatprep.subr.bf16.mxu1 %v386_v22  ;;  %v382_v23 = vpop.permute.xlu1 %381 }
  0x87   :  { %2591 = vmatpush3.bf16.msra.mxu1 %v386_v22 }
  0x88   :  { %2592 = vmatprep.subr.bf16.mxu1 %v384_v21 }
  0x89   :  { %v561_v24 = vpop.permute.xlu0 %560 }
  0x8a   :  { %2628 = vmatprep.subr.bf16.mxu0 %v561_v24  ;;  %v559_v25 = vpop.permute.xlu1 %558 }
  0x8b   :  { %2593 = vmatpush3.bf16.msra.mxu1 %v384_v21  ;;  %2629 = vmatpush3.bf16.msra.mxu0 %v561_v24 }
  0x8c   :  { %2594 = vmatprep.subr.bf16.mxu1 %v382_v23  ;;  %2630 = vmatprep.subr.bf16.mxu0 %v559_v25 }
  0x8d   :  { %v557_v26 = vpop.permute.xlu0 %556 }
  0x8e   :  { %v555_v27 = vpop.permute.xlu1 %554 }
  0x8f   :  { %2595 = vmatpush3.bf16.msra.mxu1 %v382_v23  ;;  %2631 = vmatpush3.bf16.msra.mxu0 %v559_v25 }
  0x90   :  { %2632 = vmatprep.subr.bf16.mxu0 %v557_v26 }
  0x92   :  { %2597 = vmatmul.mubr.msk.bf16.vlgmr.msra.gmra.mxu1 %vm171_vm0, %v2829_v5 }
  0x93   :  { %2600 = vmatprep.mubr.msk.bf16.mxu1 %vm171_vm0, %v2830_v6  ;;  %2633 = vmatpush3.bf16.msra.mxu0 %v557_v26 }
  0x94   :  { %2634 = vmatprep.subr.bf16.mxu0 %v555_v27 }
  0x97   :  { %2635 = vmatpush3.bf16.msra.mxu0 %v555_v27 }
  0x9a   :  { %2601 = vmatmul.mubr.msk.bf16.gmra.mxu1 %vm171_vm0, %v2831_v7  ;;  %2637 = vmatmul.mubr.msk.bf16.vlgmr.msra.gmra.mxu0 %vm171_vm0, %v2829_v5 }
  0x9b   :  { %2604 = vmatprep.mubr.msk.bf16.mxu1 %vm171_vm0, %v2832_v8  ;;  %2640 = vmatprep.mubr.msk.bf16.mxu0 %vm171_vm0, %v2830_v6 }
  0xa2   :  { %2605 = vmatmul.mubr.msk.bf16.gmra.mxu1 %vm171_vm0, %v2833_v9  ;;  %2641 = vmatmul.mubr.msk.bf16.gmra.mxu0 %vm171_vm0, %v2831_v7 }
  0xa3   :  { %2608 = vmatprep.mubr.msk.bf16.mxu1 %vm171_vm0, %v2834_v10  ;;  %2644 = vmatprep.mubr.msk.bf16.mxu0 %vm171_vm0, %v2832_v8 }
  0xaa   :  { %2609 = vmatmul.mubr.msk.bf16.gmra.mxu1 %vm171_vm0, %v2835_v11  ;;  %2645 = vmatmul.mubr.msk.bf16.gmra.mxu0 %vm171_vm0, %v2833_v9 }
  0xab   :  { %2612 = vmatprep.mubr.msk.bf16.mxu1 %vm171_vm0, %v2836_v12  ;;  %2648 = vmatprep.mubr.msk.bf16.mxu0 %vm171_vm0, %v2834_v10 }
  0xb2   :  { %2613 = vmatmul.mubr.msk.bf16.gmra.mxu1 %vm171_vm0, %v2837_v13  ;;  %2649 = vmatmul.mubr.msk.bf16.gmra.mxu0 %vm171_vm0, %v2835_v11 }
  0xb3   :  { %2616 = vmatprep.mubr.msk.bf16.mxu1 %vm171_vm0, %v2838_v14  ;;  %2652 = vmatprep.mubr.msk.bf16.mxu0 %vm171_vm0, %v2836_v12 }
  0xba   :  { %2617 = vmatmul.mubr.msk.bf16.gmra.mxu1 %vm171_vm0, %v2839_v15  ;;  %2653 = vmatmul.mubr.msk.bf16.gmra.mxu0 %vm171_vm0, %v2837_v13 }
  0xbb   :  { %2620 = vmatprep.mubr.msk.bf16.mxu1 %vm171_vm0, %v2840_v16  ;;  %2656 = vmatprep.mubr.msk.bf16.mxu0 %vm171_vm0, %v2838_v14 }
  0xc2   :  { %2621 = vmatmul.mubr.msk.bf16.gmra.mxu1 %vm171_vm0, %v2841_v17  ;;  %2657 = vmatmul.mubr.msk.bf16.gmra.mxu0 %vm171_vm0, %v2839_v15 }
  0xc3   :  { %2624 = vmatprep.mubr.msk.bf16.mxu1 %vm171_vm0, %v2842_v18  ;;  %2660 = vmatprep.mubr.msk.bf16.mxu0 %vm171_vm0, %v2840_v16 }
  0xca   :  { %2625 = vmatmul.mubr.msk.bf16.gmra.mxu1 %vm171_vm0, %v2843_v19  ;;  %2661 = vmatmul.mubr.msk.bf16.gmra.mxu0 %vm171_vm0, %v2841_v17 }
  0xcb   :  { %2664 = vmatprep.mubr.msk.bf16.mxu0 %vm171_vm0, %v2842_v18 }
  0xd2   :  { %2665 = vmatmul.mubr.msk.bf16.gmra.mxu0 %vm171_vm0, %v2843_v19 }
  0xdf   :  { %v2558_v28 = vpop.f32.mrf.mxu0 }
  0xe1   :  { %v254_v29 = vpop.f32.mrf.mxu0 }
  0xe3   :  { %v2559_v30 = vpop.f32.mrf.mxu0 }
  0xe4   :  { %v728_v31 = vpack.c.bf16 %v2559_v30, %v2558_v28 }
  0xe5   :  { %v257_v32 = vpop.f32.mrf.mxu0 }
  0xe6   :  { %v818_v33 = vsel %vm807_vm1, %v728_v31, 0  ;;  %2796 = vmatprep.subr.msk.bf16.mxu1 %vm807_vm1, %v728_v31  ;;  %v727_v34 = vpack.c.bf16 %v257_v32, %v254_v29 }
  0xe7   :  { %2669 = vmatpush3.bf16.xpose.msra.mxu1 %v818_v33  ;;  %v2562_v35 = vpop.f32.mrf.mxu0 }
  0xe8   :  { %2797 = vmatprep.subr.msk.bf16.mxu1 %vm807_vm1, %v727_v34  ;;  %v815_v38 = vsel %vm807_vm1, %v727_v34, 0 }
  0xe9   :  { %v270_v36 = vpop.f32.mrf.mxu0 }
  0xeb   :  { %v2563_v37 = vpop.f32.mrf.mxu0 }
  0xec   :  { %v730_v39 = vpack.c.bf16 %v2563_v37, %v2562_v35 }
  0xed   :  { %v273_v40 = vpop.f32.mrf.mxu0 }
  0xee   :  { %v3120_v41 = vpack.c.bf16 %v273_v40, %v270_v36  ;;  %v879_v27 = vsel %vm807_vm1, %v730_v39, 0 }
  0xef   :  { %2671 = vmatpush3.bf16.xpose.msra.mxu1 %v815_v38  ;;  %v2566_v42 = vpop.f32.mrf.mxu0 }
  0xf0   :  { %2798 = vmatprep.subr.msk.bf16.mxu1 %vm807_vm1, %v730_v39  ;;  %v876_v39 = vsel %vm807_vm1, %v3120_v41, 0 }
  0xf1   :  { %v286_v43 = vpop.f32.mrf.mxu0 }
  0xf3   :  { %v2567_v44 = vpop.f32.mrf.mxu0 }
  0xf4   :  { %v3123_v45 = vpack.c.bf16 %v2567_v44, %v2566_v42 }
  0xf5   :  { %v289_v46 = vpop.f32.mrf.mxu0 }
  0xf6   :  { %v3125_v47 = vpack.c.bf16 %v289_v46, %v286_v43 }
  0xf7   :  { %v2570_v48 = vpop.f32.mrf.mxu0 }
  0xf9   :  { %v302_v49 = vpop.f32.mrf.mxu0 }
  0xfb   :  { %v2571_v50 = vpop.f32.mrf.mxu0 }
  0xfc   :  { %v3127_v51 = vpack.c.bf16 %v2571_v50, %v2570_v48 }
  0xfd   :  { %v305_v52 = vpop.f32.mrf.mxu0 }
  0xfe   :  { %v3129_v53 = vpack.c.bf16 %v305_v52, %v302_v49 }
  0xff   :  { %v2574_v54 = vpop.f32.mrf.mxu0 }
 0x101   :  { %v318_v55 = vpop.f32.mrf.mxu0 }
 0x103   :  { %v2575_v56 = vpop.f32.mrf.mxu0 }
 0x104   :  { %v736_v57 = vpack.c.bf16 %v2575_v56, %v2574_v54 }
 0x105   :  { %v321_v58 = vpop.f32.mrf.mxu0 }
 0x106   :  { %v1062_v59 = vsel %vm807_vm1, %v736_v57, 0  ;;  %2804 = vmatprep.subr.msk.bf16.mxu0 %vm807_vm1, %v736_v57  ;;  %v735_v60 = vpack.c.bf16 %v321_v58, %v318_v55  ;;  %v940_v58 = vsel %vm807_vm1, %v3123_v45, 0 }
 0x107   :  { %2701 = vmatpush3.bf16.xpose.msra.mxu0 %v1062_v59  ;;  %v2578_v61 = vpop.f32.mrf.mxu0 }
 0x108   :  { %2805 = vmatprep.subr.msk.bf16.mxu0 %vm807_vm1, %v735_v60  ;;  %v1059_v0 = vsel %vm807_vm1, %v735_v60, 0 }
 0x109   :  { %v334_v62 = vpop.f32.mrf.mxu0 }
 0x10b   :  { %v2579_v63 = vpop.f32.mrf.mxu0 }
 0x10c   :  { %v3135_v1 = vpack.c.bf16 %v2579_v63, %v2578_v61 }
 0x10d   :  { %v337_v2 = vpop.f32.mrf.mxu0 }
 0x10e   :  { %v3137_v3 = vpack.c.bf16 %v337_v2, %v334_v62 }
 0x10f   :  { %2703 = vmatpush3.bf16.xpose.msra.mxu0 %v1059_v0  ;;  %v2582_v4 = vpop.f32.mrf.mxu0 }
 0x111   :  { %v3139_v5 = vpop.f32.mrf.mxu0 }
 0x113   :  { %v2583_v6 = vpop.f32.mrf.mxu0 }
 0x114   :  { %v3141_v7 = vpack.c.bf16 %v2583_v6, %v2582_v4  ;;  %v937_v6 = vsel %vm807_vm1, %v3125_v47, 0 }
 0x115   :  { %v3145_v8 = vpop.f32.mrf.mxu0 }
 0x116   :  { %2808 = vmatprep.subr.msk.bf16.mxu0 %vm807_vm1, %v3141_v7 }
 0x117   :  { %v3147_v9 = vpop.f32.mrf.mxu0 }
 0x119   :  { %v3149_v10 = vpop.f32.mrf.mxu0 }
 0x11b   :  { %v3151_v13 = vpop.f32.mrf.mxu0 }
 0x11d   :  { %v3153_v17 = vpop.f32.mrf.mxu0 }
 0x152   :  { %v2598_v11 = vpop.f32.mrf.mxu1 }
 0x153   :  { %v745_v20 = vmul.f32 0.125, %v2598_v11 }
 0x154   :  { %v427_v12 = vpop.f32.mrf.mxu1 }
 0x155   :  { %v743_v18 = vmul.f32 0.125, %v427_v12 }
 0x156   :  { %v2599_v14 = vpop.f32.mrf.mxu1 }
 0x157   :  { %v746_v15 = vmul.f32 0.125, %v2599_v14 }
 0x158   :  { %v430_v16 = vpop.f32.mrf.mxu1 }
 0x159   :  { %v744_v19 = vmul.f32 0.125, %v430_v16  ;;  %v776_v24 = vpack.c.bf16 %v746_v15, %v745_v20 }
 0x15a   :  { %v2602_v21 = vpop.f32.mrf.mxu1  ;;  %v3155_v22 = vpop.f32.mrf.mxu0 }
 0x15b   :  { %v775_v23 = vpack.c.bf16 %v744_v19, %v743_v18  ;;  %v749_v44 = vmul.f32 0.125, %v2602_v21 }
 0x15c   :  { %v443_v25 = vpop.f32.mrf.mxu1  ;;  %v3157_v26 = vpop.f32.mrf.mxu0 }
 0x15d   :  { %2672 = vmatprep.mubr.msk.bf16.mxu1 %vm807_vm1, %v775_v23  ;;  %v747_v30 = vmul.f32 0.125, %v443_v25 }
 0x15e   :  { %v2603_v28 = vpop.f32.mrf.mxu1  ;;  %2673 = vmatmul.mubr.msk.bf16.vlgmr.msra.gmra.mxu1 %vm807_vm1, %v776_v24  ;;  %v3162_v29 = vpop.f32.mrf.mxu0 }
 0x15f   :  { %2677 = vmatpush3.bf16.xpose.msra.mxu1 %v879_v27  ;;  %v750_v46 = vmul.f32 0.125, %v2603_v28 }
 0x160   :  { %2799 = vmatprep.subr.msk.bf16.mxu1 %vm807_vm1, %v3120_v41  ;;  %v446_v31 = vpop.f32.mrf.mxu1  ;;  %v3166_v32 = vpop.f32.mrf.mxu0 }
 0x161   :  { %v748_v33 = vmul.f32 0.125, %v446_v31  ;;  %v778_v56 = vpack.c.bf16 %v750_v46, %v749_v44 }
 0x162   :  { %v2606_v34 = vpop.f32.mrf.mxu1  ;;  %v3168_v35 = vpop.f32.mrf.mxu0 }
 0x163   :  { %v777_v36 = vpack.c.bf16 %v748_v33, %v747_v30  ;;  %v753_v18 = vmul.f32 0.125, %v2606_v34  ;;  %v1184_v34 = vsel %vm807_vm1, %v3141_v7, 0 }
 0x164   :  { %v459_v37 = vpop.f32.mrf.mxu1  ;;  %v3170_v38 = vpop.f32.mrf.mxu0 }
 0x165   :  { %2680 = vmatprep.mubr.msk.bf16.mxu1 %vm807_vm1, %v777_v36  ;;  %v751_v43 = vmul.f32 0.125, %v459_v37  ;;  %v739_v37 = vpack.c.bf16 %v3145_v8, %v3139_v5  ;;  %v998_v8 = vsel %vm807_vm1, %v3129_v53, 0 }
 0x166   :  { %v2607_v40 = vpop.f32.mrf.mxu1  ;;  %v3175_v42 = vpop.f32.mrf.mxu0 }
 0x167   :  { %2679 = vmatpush3.bf16.xpose.msra.mxu1 %v876_v39  ;;  %v754_v19 = vmul.f32 0.125, %v2607_v40  ;;  %v1001_v39 = vsel %vm807_vm1, %v3127_v51, 0  ;;  %v1181_v46 = vsel %vm807_vm1, %v739_v37, 0 }
 0x168   :  { %2800 = vmatprep.subr.msk.bf16.mxu1 %vm807_vm1, %v3123_v45  ;;  %v462_v48 = vpop.f32.mrf.mxu1  ;;  %v3179_v49 = vpop.f32.mrf.mxu0 }
 0x169   :  { %v752_v50 = vmul.f32 0.125, %v462_v48  ;;  %v780_v31 = vpack.c.bf16 %v754_v19, %v753_v18 }
 0x16a   :  { %v2610_v52 = vpop.f32.mrf.mxu1  ;;  %v3181_v54 = vpop.f32.mrf.mxu0 }
 0x16b   :  { %v779_v55 = vpack.c.bf16 %v752_v50, %v751_v43  ;;  %v757_v50 = vmul.f32 0.125, %v2610_v52  ;;  %v1123_v52 = vsel %vm807_vm1, %v3135_v1, 0 }
 0x16c   :  { %v475_v41 = vpop.f32.mrf.mxu1  ;;  %v632_v57 = vpop.f32.mrf.mxu0 }
 0x16d   :  { %v755_v23 = vmul.f32 0.125, %v475_v41 }
 0x16e   :  { %2681 = vmatmul.mubr.msk.bf16.vlgmr.msra.gmra.mxu1 %vm807_vm1, %v778_v56  ;;  %v2611_v59 = vpop.f32.mrf.mxu1  ;;  %v3186_v60 = vpop.f32.mrf.mxu0 }
 0x16f   :  { %2685 = vmatpush3.bf16.xpose.msra.mxu1 %v940_v58  ;;  %2688 = vmatprep.mubr.msk.bf16.mxu1 %vm807_vm1, %v779_v55  ;;  %v758_v55 = vmul.f32 0.125, %v2611_v59  ;;  %v791_v59 = vpack.c.bf16 %v3166_v32, %v3157_v26  ;;  %v1120_v26 = vsel %vm807_vm1, %v3137_v3, 0 }
 0x170   :  { %2801 = vmatprep.subr.msk.bf16.mxu1 %vm807_vm1, %v3125_v47  ;;  %v478_v61 = vpop.f32.mrf.mxu1  ;;  %v635_v62 = vpop.f32.mrf.mxu0 }
 0x171   :  { %v3191_v63 = vpack.c.bf16 %v635_v62, %v632_v57  ;;  %v756_v24 = vmul.f32 0.125, %v478_v61  ;;  %v782_v62 = vpack.c.bf16 %v758_v55, %v757_v50 }
 0x172   :  { %v2614_v0 = vpop.f32.mrf.mxu1  ;;  %v3193_v2 = vpop.f32.mrf.mxu0 }
 0x173   :  { %v761_v11 = vmul.f32 0.125, %v2614_v0  ;;  %v781_v36 = vpack.c.bf16 %v756_v24, %v755_v23  ;;  %v794_v24 = vpack.c.bf16 %v3175_v42, %v3168_v35 }
 0x174   :  { %v491_v4 = vpop.f32.mrf.mxu1  ;;  %v648_v45 = vpop.f32.mrf.mxu0 }
 0x175   :  { %v759_v15 = vmul.f32 0.125, %v491_v4 }
 0x176   :  { %v2615_v12 = vpop.f32.mrf.mxu1  ;;  %v3197_v14 = vpop.f32.mrf.mxu0 }
 0x177   :  { %v762_v16 = vmul.f32 0.125, %v2615_v12  ;;  %2687 = vmatpush3.bf16.xpose.msra.mxu1 %v937_v6  ;;  %v3265_v42 = vpack.c.bf16 %v3197_v14, %v3193_v2 }
 0x178   :  { %2802 = vmatprep.subr.msk.bf16.mxu1 %vm807_vm1, %v3127_v51  ;;  %v494_v20 = vpop.f32.mrf.mxu1  ;;  %v651_v21 = vpop.f32.mrf.mxu0  ;;  %v792_v51 = vpack.c.bf16 %v3162_v29, %v3155_v22 }
 0x179   :  { %v760_v25 = vmul.f32 0.125, %v494_v20  ;;  %v3201_v27 = vpack.c.bf16 %v651_v21, %v648_v45  ;;  %v784_v47 = vpack.c.bf16 %v762_v16, %v761_v11  ;;  %v3235_v11 = vpack.c.bf16 %v3186_v60, %v3181_v54 }
 0x17a   :  { %v2618_v28 = vpop.f32.mrf.mxu1  ;;  %v2654_v54 = vpop.f32.mrf.mxu0 }
 0x17b   :  { %v783_v30 = vpack.c.bf16 %v760_v25, %v759_v15  ;;  %v765_v16 = vmul.f32 0.125, %v2618_v28 }
 0x17c   :  { %v507_v33 = vpop.f32.mrf.mxu1 }
 0x17d   :  { %2704 = vmatprep.mubr.msk.bf16.mxu0 %vm807_vm1, %v783_v30  ;;  %v763_v58 = vmul.f32 0.125, %v507_v33 }
 0x17e   :  { %2689 = vmatmul.mubr.msk.bf16.vlgmr.msra.gmra.mxu1 %vm807_vm1, %v780_v31  ;;  %v2619_v40 = vpop.f32.mrf.mxu1  ;;  %2705 = vmatmul.mubr.msk.bf16.vlgmr.msra.gmra.mxu0 %vm807_vm1, %v784_v47 }
 0x17f   :  { %2693 = vmatpush3.bf16.xpose.msra.mxu1 %v1001_v39  ;;  %2696 = vmatprep.mubr.msk.bf16.mxu1 %vm807_vm1, %v781_v36  ;;  %v766_v18 = vmul.f32 0.125, %v2619_v40 }
 0x180   :  { %2717 = vmatpush3.bf16.xpose.msra.mxu0 %v1184_v34  ;;  %2803 = vmatprep.subr.msk.bf16.mxu1 %vm807_vm1, %v3129_v53  ;;  %v510_v7 = vpop.f32.mrf.mxu1 }
 0x181   :  { %2809 = vmatprep.subr.msk.bf16.mxu0 %vm807_vm1, %v739_v37  ;;  %v764_v61 = vmul.f32 0.125, %v510_v7  ;;  %v786_v60 = vpack.c.bf16 %v766_v18, %v765_v16  ;;  %v793_v37 = vpack.c.bf16 %v3179_v49, %v3170_v38 }
 0x182   :  { %v2622_v43 = vpop.f32.mrf.mxu1 }
 0x183   :  { %v769_v56 = vmul.f32 0.125, %v2622_v43  ;;  %v785_v45 = vpack.c.bf16 %v764_v61, %v763_v58 }
 0x184   :  { %v523_v5 = vpop.f32.mrf.mxu1 }
 0x185   :  { %v767_v48 = vmul.f32 0.125, %v523_v5 }
 0x186   :  { %v2623_v44 = vpop.f32.mrf.mxu1 }
 0x187   :  { %2695 = vmatpush3.bf16.xpose.msra.mxu1 %v998_v8  ;;  %v770_v41 = vmul.f32 0.125, %v2623_v44 }
 0x188   :  { %2719 = vmatpush3.bf16.xpose.msra.mxu0 %v1181_v46  ;;  %2806 = vmatprep.subr.msk.bf16.mxu1 %vm807_vm1, %v3135_v1  ;;  %v526_v57 = vpop.f32.mrf.mxu1  ;;  %v742_v1 = vpack.c.bf16 %v3151_v13, %v3147_v9  ;;  %v741_v9 = vpack.c.bf16 %v3153_v17, %v3149_v10  ;;  %v1296_v46 = vlaneseq }
 0x189   :  { %v768_v22 = vmul.f32 0.125, %v526_v57  ;;  %2732 = vmatprep.subr.bf16.mxu0 %v792_v51  ;;  %v788_v0 = vpack.c.bf16 %v770_v41, %v769_v56 }
 0x18a   :  { %v2626_v29 = vpop.f32.mrf.mxu1  ;;  %v1245_v20 = vsel %vm807_vm1, %v742_v1, 0  ;;  %v1242_v10 = vsel %vm807_vm1, %v741_v9, 0  ;;  %v1302_v14 = vand.u32 127, %v1296_v46 }
 0x18b   :  { %v787_v53 = vpack.c.bf16 %v768_v22, %v767_v48  ;;  %v773_v28 = vmul.f32 0.125, %v2626_v29  ;;  %v1297_v48 = vshrl.u32 %v1296_v46, 7 }
 0x18c   :  { %v539_v4 = vpop.f32.mrf.mxu1 }
 0x18d   :  { %2720 = vmatprep.mubr.msk.bf16.mxu0 %vm807_vm1, %v787_v53  ;;  %v771_v32 = vmul.f32 0.125, %v539_v4  ;;  %v1299_v2 = vadd.s32 16, %v1297_v48  ;;  %vm3280_vm4 = vcmp.le.s32.totalorder %v1302_v14, %v1297_v48  ;;  %v1300_v41 = vadd.s32 24, %v1297_v48 }
 0x18e   :  { %2697 = vmatmul.mubr.msk.bf16.vlgmr.msra.gmra.mxu1 %vm807_vm1, %v782_v62  ;;  %v2627_v6 = vpop.f32.mrf.mxu1  ;;  %v1298_v57 = vadd.s32 8, %v1297_v48 }
 0x18f   :  { %2709 = vmatpush3.bf16.xpose.msra.mxu1 %v1123_v52  ;;  %2712 = vmatprep.mubr.msk.bf16.mxu1 %vm807_vm1, %v785_v45  ;;  %v774_v30 = vmul.f32 0.125, %v2627_v6  ;;  %vm3276_vm2 = vcmp.le.s32.totalorder %v1302_v14, %v1299_v2  ;;  %vm3294_vm5 = vcmp.le.s32.totalorder %v1302_v14, %v1300_v41 }
 0x190   :  { %2721 = vmatmul.mubr.msk.bf16.vlgmr.msra.gmra.mxu0 %vm807_vm1, %v788_v0  ;;  %2807 = vmatprep.subr.msk.bf16.mxu1 %vm807_vm1, %v3137_v3  ;;  %v542_v12 = vpop.f32.mrf.mxu1  ;;  %v664_v3 = vpop.f32.mrf.mxu0  ;;  %vm3298_vm6 = vcmp.le.s32.totalorder %v1302_v14, %v1298_v57 }
 0x191   :  { %2733 = vmatpush3.bf16.msra.mxu0 %v792_v51  ;;  %v772_v15 = vmul.f32 0.125, %v542_v12  ;;  %v790_v34 = vpack.c.bf16 %v774_v30, %v773_v28 }
 0x192   :  { %2734 = vmatprep.subr.bf16.mxu0 %v791_v59  ;;  %v2655_v13 = vpop.f32.mrf.mxu0 }
 0x193   :  { %v789_v19 = vpack.c.bf16 %v772_v15, %v771_v32  ;;  %v3249_v21 = vpack.c.bf16 %v2655_v13, %v2654_v54 }
 0x194   :  { %v667_v23 = vpop.f32.mrf.mxu0 }
 0x195   :  { %2735 = vmatpush3.bf16.msra.mxu0 %v791_v59  ;;  %v3253_v25 = vpack.c.bf16 %v667_v23, %v664_v3 }
 0x196   :  { %2748 = vmatprep.subr.bf16.mxu0 %v3235_v11  ;;  %v2658_v47 = vpop.f32.mrf.mxu0 }
 0x197   :  { %2711 = vmatpush3.bf16.xpose.msra.mxu1 %v1120_v26 }
 0x198   :  { %2810 = vmatprep.subr.msk.bf16.mxu1 %vm807_vm1, %v742_v1  ;;  %v680_v17 = vpop.f32.mrf.mxu0 }
 0x19a   :  { %v2659_v31 = vpop.f32.mrf.mxu0 }
 0x19b   :  { %v3256_v33 = vpack.c.bf16 %v2659_v31, %v2658_v47 }
 0x19c   :  { %v683_v36 = vpop.f32.mrf.mxu0 }
 0x19d   :  { %v3260_v39 = vpack.c.bf16 %v683_v36, %v680_v17 }
 0x19e   :  { %2713 = vmatmul.mubr.msk.bf16.vlgmr.msra.gmra.mxu1 %vm807_vm1, %v786_v60  ;;  %v2662_v35 = vpop.f32.mrf.mxu0 }
 0x19f   :  { %2725 = vmatpush3.bf16.xpose.msra.mxu1 %v1245_v20  ;;  %2728 = vmatprep.mubr.msk.bf16.mxu1 %vm807_vm1, %v789_v19 }
 0x1a0   :  { %2811 = vmatprep.subr.msk.bf16.mxu1 %vm807_vm1, %v741_v9  ;;  %v696_v40 = vpop.f32.mrf.mxu0 }
 0x1a2   :  { %v2663_v7 = vpop.f32.mrf.mxu0 }
 0x1a3   :  { %v3268_v43 = vpack.c.bf16 %v2663_v7, %v2662_v35 }
 0x1a4   :  { %v699_v5 = vpop.f32.mrf.mxu0 }
 0x1a5   :  { %v3270_v38 = vpack.c.bf16 %v699_v5, %v696_v40 }
 0x1a6   :  { %v2666_v49 = vpop.f32.mrf.mxu0 }
 0x1a7   :  { %2727 = vmatpush3.bf16.xpose.msra.mxu1 %v1242_v10 }
 0x1a8   :  { %2740 = vmatprep.subr.bf16.mxu1 %v794_v24  ;;  %v3272_v51 = vpop.f32.mrf.mxu0 }
 0x1aa   :  { %v2667_v8 = vpop.f32.mrf.mxu0 }
 0x1ab   :  { %v3274_v44 = vpack.c.bf16 %v2667_v8, %v2666_v49 }
 0x1ac   :  { %v3340_v13 = vpop.f32.mrf.mxu0 }
 0x1ae   :  { %2729 = vmatmul.mubr.msk.bf16.vlgmr.msra.gmra.mxu1 %vm807_vm1, %v790_v34 }
 0x1af   :  { %2741 = vmatpush3.bf16.msra.mxu1 %v794_v24 }
 0x1b0   :  { %2742 = vmatprep.subr.bf16.mxu1 %v793_v37 }
 0x1b3   :  { %2743 = vmatpush3.bf16.msra.mxu1 %v793_v37 }
 0x1b4   :  { %2756 = vmatprep.subr.bf16.mxu1 %v3265_v42 }
 0x21e   :  { %v2674_v55 = vpop.f32.mrf.mxu1 }
 0x21f   :  { %v3286_v58 = vsel %vm3276_vm2, %v2674_v55, -1e+30 }
 0x220   :  { %v854_v61 = vpop.f32.mrf.mxu1  ;;  %v1354_v22 = vsel %vm1347_vm3, %v3286_v58, -inf }
 0x221   :  { %v3292_v29 = vsel %vm3280_vm4, %v854_v61, -1e+30  ;;  %1355 = vmax.xlane.f32.xlu0 %v1354_v22 }
 0x222   :  { %v2675_v53 = vpop.f32.mrf.mxu1  ;;  %v1348_v45 = vsel %vm1347_vm3, %v3292_v29, -inf }
 0x223   :  { %v3306_v52 = vsel %vm3294_vm5, %v2675_v53, -1e+30 }
 0x224   :  { %v857_v4 = vpop.f32.mrf.mxu1  ;;  %v1357_v1 = vsel %vm1347_vm3, %v3306_v52, -inf }
 0x225   :  { %v3310_v59 = vsel %vm3298_vm6, %v857_v4, -1e+30  ;;  %1349 = vmax.xlane.f32.xlu0 %v1348_v45 }
 0x226   :  { %v1351_v6 = vsel %vm1347_vm3, %v3310_v59, -inf }
 0x227   :  { %1352 = vmax.xlane.f32.xlu1 %v1351_v6 }
 0x229   :  { %1358 = vmax.xlane.f32.xlu0 %v1357_v1 }
 0x22e   :  { %v2682_v12 = vpop.f32.mrf.mxu1 }
 0x22f   :  { %v3318_v26 = vsel %vm3276_vm2, %v2682_v12, -1e+30 }
 0x230   :  { %v915_v32 = vpop.f32.mrf.mxu1  ;;  %v1366_v15 = vsel %vm1347_vm3, %v3318_v26, -inf }
 0x231   :  { %v3324_v16 = vsel %vm3280_vm4, %v915_v32, -1e+30  ;;  %1367 = vmax.xlane.f32.xlu1 %v1366_v15 }
 0x232   :  { %v2683_v18 = vpop.f32.mrf.mxu1  ;;  %v1360_v60 = vsel %vm1347_vm3, %v3324_v16, -inf }
 0x233   :  { %v3328_v19 = vsel %vm3294_vm5, %v2683_v18, -1e+30 }
 0x234   :  { %v918_v54 = vpop.f32.mrf.mxu1  ;;  %v1369_v20 = vsel %vm1347_vm3, %v3328_v19, -inf }
 0x235   :  { %v3336_v9 = vsel %vm3298_vm6, %v918_v54, -1e+30  ;;  %1361 = vmax.xlane.f32.xlu1 %v1360_v60  ;;  %1370 = vmax.xlane.f32.xlu0 %v1369_v20 }
 0x236   :  { %v1363_v3 = vsel %vm1347_vm3, %v3336_v9, -inf }
 0x239   :  { %1364 = vmax.xlane.f32.xlu0 %v1363_v3 }
 0x23e   :  { %v2690_v23 = vpop.f32.mrf.mxu1  ;;  %v2706_v24 = vpop.f32.mrf.mxu0 }
 0x23f   :  { %v3344_v47 = vsel %vm3276_vm2, %v2690_v23, -1e+30  ;;  %v3350_v30 = vsel %vm3276_vm2, %v2706_v24, -1e+30 }
 0x240   :  { %v976_v10 = vpop.f32.mrf.mxu1  ;;  %v1378_v17 = vsel %vm1347_vm3, %v3344_v47, -inf  ;;  %v1098_v28 = vpop.f32.mrf.mxu0  ;;  %v1402_v35 = vsel %vm1347_vm3, %v3350_v30, -inf }
 0x241   :  { %1379 = vmax.xlane.f32.xlu1 %v1378_v17  ;;  %v3362_v40 = vsel %vm3280_vm4, %v976_v10, -1e+30  ;;  %v3374_v46 = vsel %vm3280_vm4, %v1098_v28, -1e+30 }
 0x242   :  { %v2691_v31 = vpop.f32.mrf.mxu1  ;;  %v2707_v36 = vpop.f32.mrf.mxu0  ;;  %v1372_v49 = vsel %vm1347_vm3, %v3362_v40, -inf  ;;  %v1396_v14 = vsel %vm1347_vm3, %v3374_v46, -inf }
 0x243   :  { %v3354_v34 = vsel %vm3294_vm5, %v2691_v31, -1e+30  ;;  %v3366_v7 = vsel %vm3294_vm5, %v2707_v36, -1e+30 }
 0x244   :  { %v1381_v37 = vsel %vm1347_vm3, %v3354_v34, -inf  ;;  %v979_v5 = vpop.f32.mrf.mxu1  ;;  %v1405_v8 = vsel %vm1347_vm3, %v3366_v7, -inf  ;;  %v1101_v2 = vpop.f32.mrf.mxu0 }
 0x245   :  { %1382 = vmax.xlane.f32.xlu0 %v1381_v37  ;;  %1403 = vmax.xlane.f32.xlu1 %v1402_v35  ;;  %v3378_v48 = vsel %vm3298_vm6, %v979_v5, -1e+30  ;;  %v3386_v41 = vsel %vm3298_vm6, %v1101_v2, -1e+30 }
 0x246   :  { %v1375_v55 = vsel %vm1347_vm3, %v3378_v48, -inf  ;;  %v1399_v45 = vsel %vm1347_vm3, %v3386_v41, -inf }
 0x249   :  { %1373 = vmax.xlane.f32.xlu1 %v1372_v49  ;;  %1406 = vmax.xlane.f32.xlu0 %v1405_v8 }
 0x24d   :  { %1397 = vmax.xlane.f32.xlu1 %v1396_v14  ;;  %1376 = vmax.xlane.f32.xlu0 %v1375_v55 }
 0x24e   :  { %v2698_v57 = vpop.f32.mrf.mxu1 }
 0x24f   :  { %v3390_v61 = vsel %vm3276_vm2, %v2698_v57, -1e+30 }
 0x250   :  { %v2722_v22 = vpop.f32.mrf.mxu0  ;;  %v1037_v53 = vpop.f32.mrf.mxu1  ;;  %v1390_v4 = vsel %vm1347_vm3, %v3390_v61, -inf }
 0x251   :  { %v3398_v6 = vsel %vm3280_vm4, %v1037_v53, -1e+30  ;;  %1391 = vmax.xlane.f32.xlu1 %v1390_v4  ;;  %1400 = vmax.xlane.f32.xlu0 %v1399_v45  ;;  %v3446_v57 = vsel %vm3276_vm2, %v2722_v22, -1e+30 }
 0x252   :  { %v1220_v1 = vpop.f32.mrf.mxu0  ;;  %v2699_v12 = vpop.f32.mrf.mxu1  ;;  %v1384_v54 = vsel %vm1347_vm3, %v3398_v6, -inf  ;;  %v1426_v4 = vsel %vm1347_vm3, %v3446_v57, -inf }
 0x253   :  { %v3402_v32 = vsel %vm3294_vm5, %v2699_v12, -1e+30  ;;  %v3410_v20 = vsel %vm3280_vm4, %v1220_v1, -1e+30 }
 0x254   :  { %v2723_v15 = vpop.f32.mrf.mxu0  ;;  %v1040_v18 = vpop.f32.mrf.mxu1  ;;  %v1393_v60 = vsel %vm1347_vm3, %v3402_v32, -inf  ;;  %v1420_v10 = vsel %vm1347_vm3, %v3410_v20, -inf }
 0x255   :  { %v3414_v3 = vsel %vm3298_vm6, %v1040_v18, -1e+30  ;;  %1385 = vmax.xlane.f32.xlu1 %v1384_v54  ;;  %1394 = vmax.xlane.f32.xlu0 %v1393_v60  ;;  %v3458_v1 = vsel %vm3294_vm5, %v2723_v15, -1e+30 }
 0x256   :  { %v1223_v23 = vpop.f32.mrf.mxu0  ;;  %v1387_v24 = vsel %vm1347_vm3, %v3414_v3, -inf  ;;  %v1429_v22 = vsel %vm1347_vm3, %v3458_v1, -inf }
 0x257   :  { %v3422_v17 = vsel %vm3298_vm6, %v1223_v23, -1e+30 }
 0x258   :  { %v1423_v28 = vsel %vm1347_vm3, %v3422_v17, -inf }
 0x259   :  { %1388 = vmax.xlane.f32.xlu0 %v1387_v24  ;;  %1421 = vmax.xlane.f32.xlu1 %v1420_v10 }
 0x25d   :  { %1424 = vmax.xlane.f32.xlu0 %v1423_v28 }
 0x25e   :  { %v2714_v31 = vpop.f32.mrf.mxu1 }
 0x25f   :  { %v3428_v36 = vsel %vm3276_vm2, %v2714_v31, -1e+30 }
 0x260   :  { %v1159_v37 = vpop.f32.mrf.mxu1  ;;  %v1414_v35 = vsel %vm1347_vm3, %v3428_v36, -inf }
 0x261   :  { %v3434_v5 = vsel %vm3280_vm4, %v1159_v37, -1e+30  ;;  %1415 = vmax.xlane.f32.xlu1 %v1414_v35 }
 0x262   :  { %v2715_v49 = vpop.f32.mrf.mxu1  ;;  %v1408_v14 = vsel %vm1347_vm3, %v3434_v5, -inf }
 0x263   :  { %v3438_v8 = vsel %vm3294_vm5, %v2715_v49, -1e+30 }
 0x264   :  { %v1162_v2 = vpop.f32.mrf.mxu1  ;;  %v1417_v55 = vsel %vm1347_vm3, %v3438_v8, -inf }
 0x265   :  { %v3450_v53 = vsel %vm3298_vm6, %v1162_v2, -1e+30  ;;  %1409 = vmax.xlane.f32.xlu1 %v1408_v14  ;;  %1418 = vmax.xlane.f32.xlu0 %v1417_v55 }
 0x266   :  { %v1411_v45 = vsel %vm1347_vm3, %v3450_v53, -inf }
 0x269   :  { %1427 = vmax.xlane.f32.xlu1 %v1426_v4  ;;  %1412 = vmax.xlane.f32.xlu0 %v1411_v45 }
 0x26d   :  { %1430 = vmax.xlane.f32.xlu0 %v1429_v22 }
 0x26e   :  { %v2730_v12 = vpop.f32.mrf.mxu1 }
 0x26f   :  { %v3470_v15 = vsel %vm3276_vm2, %v2730_v12, -1e+30 }
 0x270   :  { %v1281_v18 = vpop.f32.mrf.mxu1  ;;  %v1438_v28 = vsel %vm1347_vm3, %v3470_v15, -inf }
 0x271   :  { %v3464_v54 = vsel %vm3280_vm4, %v1281_v18, -1e+30 }
 0x272   :  { %v2731_v60 = vpop.f32.mrf.mxu1  ;;  %v1432_v23 = vsel %vm1347_vm3, %v3464_v54, -inf }
 0x273   :  { %1433 = vmax.xlane.f32.xlu1 %v1432_v23  ;;  %v3482_v31 = vsel %vm3294_vm5, %v2731_v60, -1e+30 }
 0x274   :  { %v1284_v24 = vpop.f32.mrf.mxu1  ;;  %v1441_v50 = vsel %vm1347_vm3, %v3482_v31, -inf }
 0x275   :  { %v3474_v10 = vsel %vm3298_vm6, %v1284_v24, -1e+30 }
 0x276   :  { %v1435_v56 = vsel %vm1347_vm3, %v3474_v10, -inf }
 0x277   :  { %1439 = vmax.xlane.f32.xlu1 %v1438_v28  ;;  %1436 = vmax.xlane.f32.xlu0 %v1435_v56 }
 0x27b   :  { %1442 = vmax.xlane.f32.xlu0 %v1441_v50 }
 0x2aa   :  { %v1356_v37 = vpop.xlane.xlu0 %1355 }
 0x2ab   :  { %v1446_v0 = vsub.f32 %v3286_v58, %v1356_v37 }
 0x2ad   :  { %v1480_v4 = vmul.f32 1.442695, %v1446_v0 }
 0x2ae   :  { %v1350_v35 = vpop.xlane.xlu0 %1349 }
 0x2af   :  { %v1444_v49 = vsub.f32 %v3292_v29, %v1350_v35 }
 0x2b0   :  { %v1353_v2 = vpop.xlane.xlu1 %1352 }
 0x2b1   :  { %v1476_v14 = vmul.f32 1.442695, %v1444_v49  ;;  %v1445_v55 = vsub.f32 %v3310_v59, %v1353_v2 }
 0x2b2   :  { %v1359_v62 = vpop.xlane.xlu0 %1358 }
 0x2b3   :  { %2844 = vpow2.f32 %v1476_v14  ;;  %v1478_v45 = vmul.f32 1.442695, %v1445_v55  ;;  %v1447_v22 = vsub.f32 %v3306_v52, %v1359_v62 }
 0x2b5   :  { %2846 = vpow2.f32 %v1478_v45  ;;  %v1482_v12 = vmul.f32 1.442695, %v1447_v22 }
 0x2b6   :  { %2848 = vpow2.f32 %v1480_v4 }
 0x2b7   :  { %2850 = vpow2.f32 %v1482_v12 }
 0x2ba   :  { %v1368_v18 = vpop.xlane.xlu1 %1367 }
 0x2bb   :  { %v1450_v58 = vsub.f32 %v3318_v26, %v1368_v18 }
 0x2bd   :  { %v1488_v60 = vmul.f32 1.442695, %v1450_v58 }
 0x2be   :  { %v1362_v23 = vpop.xlane.xlu1 %1361  ;;  %v1371_v29 = vpop.xlane.xlu0 %1370 }
 0x2bf   :  { %2852 = vpow2.f32 %v1488_v60  ;;  %v1448_v24 = vsub.f32 %v3324_v16, %v1362_v23  ;;  %v1451_v59 = vsub.f32 %v3328_v19, %v1371_v29 }
 0x2c0   :  { %v2845_v28 = vpop.eup %2844 }
 0x2c1   :  { %v1484_v56 = vmul.f32 1.442695, %v1448_v24  ;;  %v1490_v50 = vmul.f32 1.442695, %v1451_v59  ;;  %v1540_v52 = vsel %vm1347_vm3, %v2845_v28, 0.0 }
 0x2c2   :  { %v3494_v37 = vpop.eup %2846  ;;  %v1365_v0 = vpop.xlane.xlu0 %1364  ;;  %1541 = vadd.xlane.f32.xlu1 %v1540_v52 }
 0x2c3   :  { %v3496_v35 = vpop.eup %2848  ;;  %2854 = vpow2.f32 %v1484_v56  ;;  %v1449_v26 = vsub.f32 %v3336_v9, %v1365_v0  ;;  %v1636_v49 = vpack.c.bf16 %v3494_v37, %v2845_v28 }
 0x2c4   :  { %v3500_v2 = vpop.eup %2850  ;;  %2856 = vpow2.f32 %v1490_v50 }
 0x2c5   :  { %v1486_v16 = vmul.f32 1.442695, %v1449_v26  ;;  %2736 = vmatprep.mubr.msk.bf16.mxu0 %vm1347_vm3, %v1636_v49  ;;  %v1637_v19 = vpack.c.bf16 %v3500_v2, %v3496_v35 }
 0x2c7   :  { %2858 = vpow2.f32 %v1486_v16  ;;  %2737 = vmatmul.mubr.msk.bf16.vlgmr.msra.gmra.mxu0 %vm1347_vm3, %v1637_v19 }
 0x2c8   :  { %2749 = vmatpush3.bf16.msra.mxu0 %v3235_v11 }
 0x2c9   :  { %2750 = vmatprep.subr.bf16.mxu0 %v3191_v63 }
 0x2ca   :  { %v1380_v14 = vpop.xlane.xlu1 %1379 }
 0x2cb   :  { %v1454_v9 = vsub.f32 %v3344_v47, %v1380_v14 }
 0x2cc   :  { %v2853_v55 = vpop.eup %2852  ;;  %2751 = vmatpush3.bf16.msra.mxu0 %v3191_v63 }
 0x2cd   :  { %v1496_v4 = vmul.f32 1.442695, %v1454_v9  ;;  %2764 = vmatprep.subr.bf16.mxu0 %v3249_v21  ;;  %v1558_v62 = vsel %vm1347_vm3, %v2853_v55, 0.0 }
 0x2ce   :  { %v1383_v45 = vpop.xlane.xlu0 %1382  ;;  %v1404_v22 = vpop.xlane.xlu1 %1403  ;;  %1559 = vadd.xlane.f32.xlu1 %v1558_v62 }
 0x2cf   :  { %2860 = vpow2.f32 %v1496_v4  ;;  %v1455_v12 = vsub.f32 %v3354_v34, %v1383_v45  ;;  %v1462_v11 = vsub.f32 %v3350_v30, %v1404_v22 }
 0x2d0   :  { %v2855_v18 = vpop.eup %2854 }
 0x2d1   :  { %v2857_v58 = vpop.eup %2856  ;;  %v1498_v60 = vmul.f32 1.442695, %v1455_v12  ;;  %v1512_v47 = vmul.f32 1.442695, %v1462_v11  ;;  %v1552_v23 = vsel %vm1347_vm3, %v2855_v18, 0.0 }
 0x2d2   :  { %v1374_v63 = vpop.xlane.xlu1 %1373  ;;  %v1407_v29 = vpop.xlane.xlu0 %1406  ;;  %1553 = vadd.xlane.f32.xlu1 %v1552_v23  ;;  %v1561_v24 = vsel %vm1347_vm3, %v2857_v58, 0.0  ;;  %v1639_v49 = vpack.c.bf16 %v2857_v58, %v2853_v55 }
 0x2d3   :  { %2862 = vpow2.f32 %v1498_v60  ;;  %v1452_v59 = vsub.f32 %v3362_v40, %v1374_v63  ;;  %v1463_v28 = vsub.f32 %v3366_v7, %v1407_v29  ;;  %1562 = vadd.xlane.f32.xlu0 %v1561_v24 }
 0x2d4   :  { %v2859_v34 = vpop.eup %2858  ;;  %2864 = vpow2.f32 %v1512_v47 }
 0x2d5   :  { %v1492_v30 = vmul.f32 1.442695, %v1452_v59  ;;  %v1514_v56 = vmul.f32 1.442695, %v1463_v28  ;;  %v1555_v50 = vsel %vm1347_vm3, %v2859_v34, 0.0  ;;  %v1638_v52 = vpack.c.bf16 %v2859_v34, %v2855_v18 }
 0x2d6   :  { %v1398_v0 = vpop.xlane.xlu1 %1397  ;;  %v1377_v26 = vpop.xlane.xlu0 %1376 }
 0x2d7   :  { %2866 = vpow2.f32 %v1492_v30  ;;  %v1460_v16 = vsub.f32 %v3374_v46, %v1398_v0  ;;  %v1453_v19 = vsub.f32 %v3378_v48, %v1377_v26  ;;  %1556 = vadd.xlane.f32.xlu0 %v1555_v50  ;;  %2744 = vmatprep.mubr.msk.bf16.mxu1 %vm1347_vm3, %v1638_v52 }
 0x2d8   :  { %2868 = vpow2.f32 %v1514_v56  ;;  %2745 = vmatmul.mubr.msk.bf16.vlgmr.msra.gmra.mxu1 %vm1347_vm3, %v1639_v49 }
 0x2d9   :  { %v1508_v40 = vmul.f32 1.442695, %v1460_v16  ;;  %v1494_v7 = vmul.f32 1.442695, %v1453_v19  ;;  %2757 = vmatpush3.bf16.msra.mxu1 %v3265_v42 }
 0x2da   :  { %2758 = vmatprep.subr.bf16.mxu1 %v3201_v27  ;;  %v1392_v14 = vpop.xlane.xlu1 %1391  ;;  %v1401_v9 = vpop.xlane.xlu0 %1400 }
 0x2db   :  { %2870 = vpow2.f32 %v1508_v40  ;;  %v1458_v55 = vsub.f32 %v3390_v61, %v1392_v14  ;;  %v1461_v46 = vsub.f32 %v3386_v41, %v1401_v9 }
 0x2dc   :  { %v2861_v48 = vpop.eup %2860  ;;  %2872 = vpow2.f32 %v1494_v7 }
 0x2dd   :  { %v1504_v4 = vmul.f32 1.442695, %v1458_v55  ;;  %v1510_v62 = vmul.f32 1.442695, %v1461_v46  ;;  %2759 = vmatpush3.bf16.msra.mxu1 %v3201_v27  ;;  %v1570_v45 = vsel %vm1347_vm3, %v2861_v48, 0.0 }
 0x2de   :  { %2772 = vmatprep.subr.bf16.mxu1 %v3256_v33  ;;  %v1386_v42 = vpop.xlane.xlu1 %1385  ;;  %v1395_v22 = vpop.xlane.xlu0 %1394  ;;  %1571 = vadd.xlane.f32.xlu1 %v1570_v45 }
 0x2df   :  { %2874 = vpow2.f32 %v1504_v4  ;;  %v1456_v12 = vsub.f32 %v3398_v6, %v1386_v42  ;;  %v1459_v61 = vsub.f32 %v3402_v32, %v1395_v22 }
 0x2e0   :  { %v2863_v11 = vpop.eup %2862  ;;  %2876 = vpow2.f32 %v1510_v62 }
 0x2e1   :  { %v3532_v41 = vpop.eup %2864  ;;  %v1506_v18 = vmul.f32 1.442695, %v1459_v61  ;;  %v1573_v58 = vsel %vm1347_vm3, %v2863_v11, 0.0  ;;  %v1500_v27 = vmul.f32 1.442695, %v1456_v12  ;;  %v1641_v16 = vpack.c.bf16 %v2863_v11, %v2861_v48 }
 0x2e2   :  { %v1389_v60 = vpop.xlane.xlu0 %1388  ;;  %v1594_v47 = vsel %vm1347_vm3, %v3532_v41, 0.0  ;;  %v1422_v23 = vpop.xlane.xlu1 %1421  ;;  %1574 = vadd.xlane.f32.xlu0 %v1573_v58 }
 0x2e3   :  { %v1457_v63 = vsub.f32 %v3414_v3, %v1389_v60  ;;  %1595 = vadd.xlane.f32.xlu1 %v1594_v47  ;;  %v1468_v6 = vsub.f32 %v3410_v20, %v1422_v23  ;;  %2878 = vpow2.f32 %v1506_v18 }
 0x2e4   :  { %v2867_v32 = vpop.eup %2866  ;;  %2880 = vpow2.f32 %v1500_v27 }
 0x2e5   :  { %v2869_v29 = vpop.eup %2868  ;;  %v1502_v24 = vmul.f32 1.442695, %v1457_v63  ;;  %v1564_v59 = vsel %vm1347_vm3, %v2867_v32, 0.0  ;;  %v1524_v28 = vmul.f32 1.442695, %v1468_v6 }
 0x2e6   :  { %v1597_v34 = vsel %vm1347_vm3, %v2869_v29, 0.0  ;;  %v1425_v30 = vpop.xlane.xlu0 %1424 }
 0x2e7   :  { %2882 = vpow2.f32 %v1502_v24  ;;  %1565 = vadd.xlane.f32.xlu1 %v1564_v59  ;;  %1598 = vadd.xlane.f32.xlu0 %v1597_v34  ;;  %v1469_v56 = vsub.f32 %v3422_v17, %v1425_v30 }
 0x2e8   :  { %v2871_v3 = vpop.eup %2870  ;;  %2884 = vpow2.f32 %v1524_v28 }
 0x2e9   :  { %v2873_v50 = vpop.eup %2872  ;;  %v1526_v52 = vmul.f32 1.442695, %v1469_v56  ;;  %v1588_v20 = vsel %vm1347_vm3, %v2871_v3, 0.0 }
 0x2ea   :  { %v1416_v0 = vpop.xlane.xlu1 %1415  ;;  %v1567_v26 = vsel %vm1347_vm3, %v2873_v50, 0.0  ;;  %v1640_v49 = vpack.c.bf16 %v2873_v50, %v2867_v32 }
 0x2eb   :  { %2886 = vpow2.f32 %v1526_v52  ;;  %1589 = vadd.xlane.f32.xlu1 %v1588_v20  ;;  %1568 = vadd.xlane.f32.xlu0 %v1567_v26  ;;  %v1466_v4 = vsub.f32 %v3428_v36, %v1416_v0 }
 0x2ec   :  { %v2875_v19 = vpop.eup %2874  ;;  %2752 = vmatprep.mubr.msk.bf16.mxu0 %vm1347_vm3, %v1640_v49 }
 0x2ed   :  { %v2877_v40 = vpop.eup %2876  ;;  %2753 = vmatmul.mubr.msk.bf16.vlgmr.msra.gmra.mxu0 %vm1347_vm3, %v1641_v16  ;;  %v1582_v17 = vsel %vm1347_vm3, %v2875_v19, 0.0  ;;  %v1520_v18 = vmul.f32 1.442695, %v1466_v4 }
 0x2ee   :  { %2765 = vmatpush3.bf16.msra.mxu0 %v3249_v21  ;;  %v1410_v7 = vpop.xlane.xlu1 %1409  ;;  %v1591_v14 = vsel %vm1347_vm3, %v2877_v40, 0.0  ;;  %v1419_v9 = vpop.xlane.xlu0 %1418  ;;  %v1644_v55 = vpack.c.bf16 %v2877_v40, %v2871_v3 }
 0x2ef   :  { %2766 = vmatprep.subr.bf16.mxu0 %v3253_v25  ;;  %1583 = vadd.xlane.f32.xlu1 %v1582_v17  ;;  %v1464_v46 = vsub.f32 %v3434_v5, %v1410_v7  ;;  %v1467_v48 = vsub.f32 %v3438_v8, %v1419_v9  ;;  %v1645_v8 = vpack.c.bf16 %v2869_v29, %v3532_v41 }
 0x2f0   :  { %1592 = vadd.xlane.f32.xlu0 %v1591_v14  ;;  %2768 = vmatprep.mubr.msk.bf16.mxu0 %vm1347_vm3, %v1644_v55  ;;  %v2879_v62 = vpop.eup %2878 }
 0x2f1   :  { %v1516_v45 = vmul.f32 1.442695, %v1464_v46  ;;  %v1522_v21 = vmul.f32 1.442695, %v1467_v48  ;;  %v1585_v22 = vsel %vm1347_vm3, %v2879_v62, 0.0  ;;  %v3556_v61 = vpop.eup %2880  ;;  %v1643_v60 = vpack.c.bf16 %v2879_v62, %v2875_v19 }
 0x2f2   :  { %2767 = vmatpush3.bf16.msra.mxu0 %v3253_v25  ;;  %v1428_v42 = vpop.xlane.xlu1 %1427  ;;  %v1413_v12 = vpop.xlane.xlu0 %1412 }
 0x2f3   :  { %2780 = vmatprep.subr.bf16.mxu0 %v3268_v43  ;;  %v1470_v5 = vsub.f32 %v3446_v57, %v1428_v42  ;;  %v1465_v36 = vsub.f32 %v3450_v53, %v1413_v12  ;;  %2888 = vpow2.f32 %v1516_v45  ;;  %v1549_v12 = vsel %vm1347_vm3, %v3500_v2, 0.0 }
 0x2f4   :  { %v3562_v11 = vpop.eup %2882  ;;  %1586 = vadd.xlane.f32.xlu0 %v1585_v22  ;;  %2890 = vpow2.f32 %v1522_v21  ;;  %v1546_v21 = vsel %vm1347_vm3, %v3496_v35, 0.0  ;;  %v1543_v22 = vsel %vm1347_vm3, %v3494_v37, 0.0 }
 0x2f5   :  { %v1528_v25 = vmul.f32 1.442695, %v1470_v5  ;;  %v1518_v58 = vmul.f32 1.442695, %v1465_v36  ;;  %2769 = vmatmul.mubr.msk.bf16.vlgmr.msra.gmra.mxu0 %vm1347_vm3, %v1645_v8  ;;  %v1642_v27 = vpack.c.bf16 %v3562_v11, %v3556_v61  ;;  %v2885_v53 = vpop.eup %2884 }
 0x2f6   :  { %2781 = vmatpush3.bf16.msra.mxu0 %v3268_v43  ;;  %v1431_v57 = vpop.xlane.xlu0 %1430 }
 0x2f7   :  { %2892 = vpow2.f32 %v1528_v25  ;;  %2782 = vmatprep.subr.bf16.mxu0 %v3270_v38  ;;  %v1471_v41 = vsub.f32 %v3458_v1, %v1431_v57  ;;  %2760 = vmatprep.mubr.msk.bf16.mxu1 %vm1347_vm3, %v1642_v27 }
 0x2f8   :  { %v2887_v47 = vpop.eup %2886  ;;  %2894 = vpow2.f32 %v1518_v58  ;;  %2761 = vmatmul.mubr.msk.bf16.vlgmr.msra.gmra.mxu1 %vm1347_vm3, %v1643_v60 }
 0x2f9   :  { %2896 = vpow2.f32 %v1520_v18  ;;  %v1530_v23 = vmul.f32 1.442695, %v1471_v41  ;;  %2773 = vmatpush3.bf16.msra.mxu1 %v3256_v33  ;;  %v1648_v63 = vpack.c.bf16 %v2887_v47, %v2885_v53  ;;  %v1615_v40 = vsel %vm1347_vm3, %v2887_v47, 0.0 }
 0x2fa   :  { %2783 = vmatpush3.bf16.msra.mxu0 %v3270_v38  ;;  %2774 = vmatprep.subr.bf16.mxu1 %v3260_v39 }
 0x2fb   :  { %2898 = vpow2.f32 %v1530_v23  ;;  %2784 = vmatprep.mubr.msk.bf16.mxu0 %vm1347_vm3, %v1648_v63 }
 0x2fc   :  { %v1434_v43 = vpop.xlane.xlu1 %1433 }
 0x2fd   :  { %2775 = vmatpush3.bf16.msra.mxu1 %v3260_v39  ;;  %v1472_v1 = vsub.f32 %v3464_v54, %v1434_v43 }
 0x2fe   :  { %2788 = vmatprep.subr.bf16.mxu1 %v3274_v44 }
 0x2ff   :  { %v1532_v29 = vmul.f32 1.442695, %v1472_v1 }
 0x300   :  { %v1440_v6 = vpop.xlane.xlu1 %1439  ;;  %v1437_v32 = vpop.xlane.xlu0 %1436 }
 0x301   :  { %v1474_v33 = vsub.f32 %v3470_v15, %v1440_v6  ;;  %v1473_v24 = vsub.f32 %v3474_v10, %v1437_v32  ;;  %v2889_v38 = vpop.eup %2888  ;;  %2900 = vpow2.f32 %v1532_v29  ;;  %v805_v10 = vpack.c.bf16 %v3340_v13, %v3272_v51 }
 0x302   :  { %v2891_v59 = vpop.eup %2890  ;;  %v1612_v51 = vsel %vm1347_vm3, %v2885_v53, 0.0  ;;  %v1579_v13 = vsel %vm1347_vm3, %v3562_v11, 0.0  ;;  %v1600_v14 = vsel %vm1347_vm3, %v2889_v38, 0.0 }
 0x303   :  { %v1534_v28 = vmul.f32 1.442695, %v1473_v24  ;;  %v1536_v30 = vmul.f32 1.442695, %v1474_v33  ;;  %v1609_v55 = vsel %vm1347_vm3, %v2891_v59, 0.0 }
 0x304   :  { %v2893_v34 = vpop.eup %2892  ;;  %v1443_v56 = vpop.xlane.xlu0 %1442 }
 0x305   :  { %v2895_v3 = vpop.eup %2894  ;;  %v1475_v39 = vsub.f32 %v3482_v31, %v1443_v56  ;;  %v1618_v54 = vsel %vm1347_vm3, %v2893_v34, 0.0  ;;  %2902 = vpow2.f32 %v1534_v28  ;;  %v1576_v31 = vsel %vm1347_vm3, %v3556_v61, 0.0 }
 0x306   :  { %v2897_v50 = vpop.eup %2896  ;;  %1619 = vadd.xlane.f32.xlu1 %v1618_v54  ;;  %v1646_v52 = vpack.c.bf16 %v2895_v3, %v2889_v38  ;;  %2904 = vpow2.f32 %v1536_v30  ;;  %v1603_v4 = vsel %vm1347_vm3, %v2895_v3, 0.0 }
 0x307   :  { %v1538_v20 = vmul.f32 1.442695, %v1475_v39  ;;  %v1647_v15 = vpack.c.bf16 %v2891_v59, %v2897_v50  ;;  %v1606_v16 = vsel %vm1347_vm3, %v2897_v50, 0.0 }
 0x308   :  { %v2899_v0 = vpop.eup %2898  ;;  %2776 = vmatprep.mubr.msk.bf16.mxu1 %vm1347_vm3, %v1646_v52 }
 0x309   :  { %2906 = vpow2.f32 %v1538_v20  ;;  %2777 = vmatmul.mubr.msk.bf16.vlgmr.msra.gmra.mxu1 %vm1347_vm3, %v1647_v15  ;;  %v1621_v26 = vsel %vm1347_vm3, %v2899_v0, 0.0  ;;  %v1649_v49 = vpack.c.bf16 %v2899_v0, %v2893_v34 }
 0x30a   :  { %2789 = vmatpush3.bf16.msra.mxu1 %v3274_v44  ;;  %1577 = vadd.xlane.f32.xlu1 %v1576_v31 }
 0x30b   :  { %2790 = vmatprep.subr.bf16.mxu1 %v805_v10  ;;  %1622 = vadd.xlane.f32.xlu0 %v1621_v26 }
 0x30c   :  { %2785 = vmatmul.mubr.msk.bf16.vlgmr.msra.gmra.mxu0 %vm1347_vm3, %v1649_v49 }
 0x30e   :  { %2791 = vmatpush3.bf16.msra.mxu1 %v805_v10  ;;  %1613 = vadd.xlane.f32.xlu1 %v1612_v51  ;;  %v2901_v19 = vpop.eup %2900 }
 0x30f   :  { %1580 = vadd.xlane.f32.xlu0 %v1579_v13  ;;  %v1624_v62 = vsel %vm1347_vm3, %v2901_v19, 0.0 }
 0x312   :  { %1607 = vadd.xlane.f32.xlu1 %v1606_v16  ;;  %v2903_v44 = vpop.eup %2902 }
 0x313   :  { %1616 = vadd.xlane.f32.xlu0 %v1615_v40  ;;  %v1650_v17 = vpack.c.bf16 %v2903_v44, %v2901_v19  ;;  %v2905_v7 = vpop.eup %2904  ;;  %v1627_v42 = vsel %vm1347_vm3, %v2903_v44, 0.0 }
 0x314   :  { %v1630_v48 = vsel %vm1347_vm3, %v2905_v7, 0.0 }
 0x315   :  { %2792 = vmatprep.mubr.msk.bf16.mxu1 %vm1347_vm3, %v1650_v17 }
 0x316   :  { %v2907_v9 = vpop.eup %2906  ;;  %1601 = vadd.xlane.f32.xlu1 %v1600_v14 }
 0x317   :  { %1610 = vadd.xlane.f32.xlu0 %v1609_v55  ;;  %v1651_v46 = vpack.c.bf16 %v2907_v9, %v2905_v7  ;;  %v1633_v45 = vsel %vm1347_vm3, %v2907_v9, 0.0 }
 0x319   :  { %2793 = vmatmul.mubr.msk.bf16.vlgmr.msra.gmra.mxu1 %vm1347_vm3, %v1651_v46 }
 0x31a   :  { %1631 = vadd.xlane.f32.xlu1 %v1630_v48 }
 0x31b   :  { %1604 = vadd.xlane.f32.xlu0 %v1603_v4 }
 0x31e   :  { %1625 = vadd.xlane.f32.xlu1 %v1624_v62 }
 0x31f   :  { %1634 = vadd.xlane.f32.xlu0 %v1633_v45 }
 0x322   :  { %1547 = vadd.xlane.f32.xlu1 %v1546_v21 }
 0x323   :  { %1628 = vadd.xlane.f32.xlu0 %v1627_v42 }
 0x327   :  { %1544 = vadd.xlane.f32.xlu0 %v1543_v22 }
 0x32b   :  { %1550 = vadd.xlane.f32.xlu0 %v1549_v12 }
 0x34b   :  { %v1542_v61 = vpop.xlane.xlu1 %1541 }
 0x34c   :  { %2908 = vrcp.f32 %v1542_v61 }
 0x357   :  { %v1560_v5 = vpop.xlane.xlu1 %1559 }
 0x358   :  { %2910 = vrcp.f32 %v1560_v5 }
 0x359   :  { %v2909_v37 = vpop.eup %2908 }
 0x35b   :  { %v1554_v8 = vpop.xlane.xlu1 %1553 }
 0x35c   :  { %v1563_v36 = vpop.xlane.xlu0 %1562  ;;  %2912 = vrcp.f32 %v1554_v8 }
 0x360   :  { %v1557_v18 = vpop.xlane.xlu0 %1556 }
 0x361   :  { %2914 = vrcp.f32 %v1557_v18 }
 0x362   :  { %2916 = vrcp.f32 %v1563_v36 }
 0x365   :  { %v2911_v29 = vpop.eup %2910 }
 0x367   :  { %v1572_v11 = vpop.xlane.xlu1 %1571 }
 0x368   :  { %2918 = vrcp.f32 %v1572_v11 }
 0x369   :  { %v2913_v34 = vpop.eup %2912 }
 0x36b   :  { %v1575_v25 = vpop.xlane.xlu0 %1574 }
 0x36c   :  { %v1596_v35 = vpop.xlane.xlu1 %1595  ;;  %2920 = vrcp.f32 %v1575_v25 }
 0x36e   :  { %v2915_v39 = vpop.eup %2914 }
 0x36f   :  { %v2917_v20 = vpop.eup %2916 }
 0x370   :  { %v1599_v58 = vpop.xlane.xlu0 %1598  ;;  %v1566_v27 = vpop.xlane.xlu1 %1565 }
 0x371   :  { %2922 = vrcp.f32 %v1566_v27 }
 0x372   :  { %2924 = vrcp.f32 %v1596_v35 }
 0x374   :  { %v1569_v57 = vpop.xlane.xlu0 %1568  ;;  %v1590_v60 = vpop.xlane.xlu1 %1589 }
 0x375   :  { %2926 = vrcp.f32 %v1569_v57  ;;  %v2919_v40 = vpop.eup %2918 }
 0x376   :  { %2928 = vrcp.f32 %v1599_v58 }
 0x377   :  { %2930 = vrcp.f32 %v1590_v60 }
 0x378   :  { %v1584_v23 = vpop.xlane.xlu1 %1583 }
 0x379   :  { %v1593_v47 = vpop.xlane.xlu0 %1592  ;;  %v2921_v14 = vpop.eup %2920 }
 0x37d   :  { %v1587_v43 = vpop.xlane.xlu0 %1586 }
 0x37e   :  { %v2923_v55 = vpop.eup %2922 }
 0x37f   :  { %v2925_v45 = vpop.eup %2924 }
 0x382   :  { %v2927_v42 = vpop.eup %2926 }
 0x383   :  { %v2929_v5 = vpop.eup %2928 }
 0x384   :  { %v2931_v8 = vpop.eup %2930 }
 0x387   :  { %v3612_v53 = vpop.f32.mrf.mxu0 }
 0x389   :  { %v1692_v41 = vpop.f32.mrf.mxu0 }
 0x38a   :  { %v2124_v2 = vmul.f32 %v2909_v37, %v1692_v41 }
 0x38b   :  { %v3637_v26 = vpop.f32.mrf.mxu0 }
 0x38c   :  { %2156 = vst.msk [vmem:[#allocation5] sm:$0xff] %vm807_vm1, %v2124_v2 }
 0x38d   :  { %v1695_v13 = vpop.f32.mrf.mxu0 }
 0x38f   :  { %v3615_v63 = vpop.xlane.xlu1 %1619 }
 0x393   :  { %v3617_v1 = vpop.xlane.xlu1 %1577 }
 0x394   :  { %v3619_v6 = vpop.xlane.xlu0 %1622 }
 0x397   :  { %v3621_v32 = vpop.xlane.xlu1 %1613 }
 0x398   :  { %v3623_v33 = vpop.xlane.xlu0 %1580  ;;  %v2746_v24 = vpop.f32.mrf.mxu1 }
 0x399   :  { %v2130_v38 = vmul.f32 %v2911_v29, %v2746_v24 }
 0x39a   :  { %v1747_v59 = vpop.f32.mrf.mxu1 }
 0x39b   :  { %2168 = vrot.lane.b32.xlu1 %v2130_v38, %s3021_s1  ;;  %v3625_v28 = vpop.xlane.xlu1 %1607  ;;  %v2128_v3 = vmul.f32 %v2913_v34, %v1747_v59 }
 0x39c   :  { %v3627_v30 = vpop.xlane.xlu0 %1616  ;;  %v2747_v56 = vpop.f32.mrf.mxu1 }
 0x39d   :  { %v2131_v0 = vmul.f32 %v2917_v20, %v2747_v56 }
 0x39e   :  { %v1750_v54 = vpop.f32.mrf.mxu1 }
 0x39f   :  { %v2129_v50 = vmul.f32 %v2915_v39, %v1750_v54  ;;  %2164 = vrot.lane.b32.xlu1 %v2128_v3, %s3021_s1  ;;  %v3629_v52 = vpop.xlane.xlu1 %1601 }
 0x3a0   :  { %v3631_v15 = vpop.xlane.xlu0 %1610 }
 0x3a1   :  { %2166 = vrot.lane.b32.xlu0 %v2129_v50, %s3021_s1 }
 0x3a3   :  { %v3633_v10 = vpop.xlane.xlu1 %1631  ;;  %2170 = vrot.lane.b32.xlu1 %v2131_v0, %s3021_s1 }
 0x3a4   :  { %v3635_v31 = vpop.xlane.xlu0 %1604 }
 0x3a7   :  { %v3639_v49 = vpop.xlane.xlu1 %1625 }
 0x3a8   :  { %v3641_v51 = vpop.xlane.xlu0 %1634 }
 0x3ab   :  { %v1548_v16 = vpop.xlane.xlu1 %1547 }
 0x3ac   :  { %2932 = vrcp.f32 %v1548_v16  ;;  %v3643_v19 = vpop.xlane.xlu0 %1628 }
 0x3ad   :  { %v2754_v44 = vpop.f32.mrf.mxu0  ;;  %2934 = vrcp.f32 %v1584_v23 }
 0x3ae   :  { %v2134_v17 = vmul.f32 %v2919_v40, %v2754_v44  ;;  %2936 = vrcp.f32 %v1593_v47 }
 0x3af   :  { %v1802_v7 = vpop.f32.mrf.mxu0 }
 0x3b0   :  { %2189 = vrot.lane.b32.xlu0 %v2134_v17, %s3022_s25  ;;  %v1545_v9 = vpop.xlane.xlu0 %1544  ;;  %v2132_v48 = vmul.f32 %v2923_v55, %v1802_v7 }
 0x3b1   :  { %2938 = vrcp.f32 %v1545_v9  ;;  %v2755_v46 = vpop.f32.mrf.mxu0 }
 0x3b2   :  { %v2135_v4 = vmul.f32 %v2921_v14, %v2755_v46  ;;  %2940 = vrcp.f32 %v1587_v43 }
 0x3b3   :  { %v1805_v62 = vpop.f32.mrf.mxu0 }
 0x3b4   :  { %2185 = vrot.lane.b32.xlu0 %v2132_v48, %s3022_s25  ;;  %2191 = vrot.lane.b32.xlu1 %v2135_v4, %s3022_s25  ;;  %v1551_v21 = vpop.xlane.xlu0 %1550  ;;  %v2133_v12 = vmul.f32 %v2927_v42, %v1805_v62 }
 0x3b5   :  { %2942 = vrcp.f32 %v1551_v21  ;;  %v2770_v22 = vpop.f32.mrf.mxu0 }
 0x3b6   :  { %v2142_v61 = vmul.f32 %v2925_v45, %v2770_v22  ;;  %2944 = vrcp.f32 %v3615_v63 }
 0x3b7   :  { %v1912_v36 = vpop.f32.mrf.mxu0  ;;  %2946 = vrcp.f32 %v3617_v1 }
 0x3b8   :  { %2231 = vrot.lane.b32.xlu0 %v2142_v61, %s3017_s12  ;;  %2187 = vrot.lane.b32.xlu1 %v2133_v12, %s3022_s25  ;;  %v2762_v11 = vpop.f32.mrf.mxu1  ;;  %v2140_v35 = vmul.f32 %v2931_v8, %v1912_v36  ;;  %2948 = vrcp.f32 %v3619_v6 }
 0x3b9   :  { %v2933_v18 = vpop.eup %2932  ;;  %v2771_v25 = vpop.f32.mrf.mxu0  ;;  %2950 = vrcp.f32 %v3621_v32 }
 0x3ba   :  { %v2143_v58 = vmul.f32 %v2929_v5, %v2771_v25  ;;  %v2126_v27 = vmul.f32 %v2933_v18, %v3612_v53  ;;  %v1857_v57 = vpop.f32.mrf.mxu1  ;;  %v2935_v37 = vpop.eup %2934  ;;  %2952 = vrcp.f32 %v3623_v33 }
 0x3bb   :  { %v1915_v60 = vpop.f32.mrf.mxu0  ;;  %v2937_v41 = vpop.eup %2936  ;;  %v2138_v2 = vmul.f32 %v2935_v37, %v2762_v11  ;;  %2954 = vrcp.f32 %v3625_v28 }
 0x3bc   :  { %2227 = vrot.lane.b32.xlu0 %v2140_v35, %s3017_s12  ;;  %2233 = vrot.lane.b32.xlu1 %v2143_v58, %s3017_s12  ;;  %2158 = vst.msk [vmem:[#allocation5 + $0x10] sm:$0xff] %vm807_vm1, %v2126_v27  ;;  %v2141_v23 = vmul.f32 %v2937_v41, %v1915_v60  ;;  %v2763_v43 = vpop.f32.mrf.mxu1  ;;  %2956 = vrcp.f32 %v3627_v30 }
 0x3bd   :  { %2958 = vrcp.f32 %v3629_v52 }
 0x3be   :  { %v2939_v47 = vpop.eup %2938  ;;  %v1860_v63 = vpop.f32.mrf.mxu1  ;;  %2960 = vrcp.f32 %v3631_v15 }
 0x3bf   :  { %v2125_v29 = vmul.f32 %v2939_v47, %v1695_v13  ;;  %v2941_v53 = vpop.eup %2940  ;;  %2962 = vrcp.f32 %v3635_v31 }
 0x3c0   :  { %2210 = vrot.lane.b32.xlu0 %v2138_v2, %s3023_s26  ;;  %2229 = vrot.lane.b32.xlu1 %v2141_v23, %s3017_s12  ;;  %v2139_v38 = vmul.f32 %v2941_v53, %v2763_v43  ;;  %2964 = vrcp.f32 %v3639_v49 }
 0x3c1   :  { %2157 = vst.msk [vmem:[#allocation5 + $0x8] sm:$0xff] %vm807_vm1, %v2125_v29  ;;  %2966 = vrcp.f32 %v3633_v10 }
 0x3c2   :  { %v2943_v24 = vpop.eup %2942  ;;  %2968 = vrcp.f32 %v3643_v19 }
 0x3c3   :  { %v2127_v59 = vmul.f32 %v2943_v24, %v3637_v26  ;;  %v2945_v1 = vpop.eup %2944  ;;  %2970 = vrcp.f32 %v3641_v51 }
 0x3c4   :  { %2212 = vrot.lane.b32.xlu1 %v2139_v38, %s3023_s26  ;;  %v2947_v39 = vpop.eup %2946 }
 0x3c5   :  { %2159 = vst.msk [vmem:[#allocation5 + $0x18] sm:$0xff] %vm807_vm1, %v2127_v59  ;;  %v2949_v32 = vpop.eup %2948  ;;  %v2136_v50 = vmul.f32 %v2947_v39, %v1857_v57 }
 0x3c6   :  { %v2951_v28 = vpop.eup %2950 }
 0x3c7   :  { %v2953_v52 = vpop.eup %2952 }
 0x3c8   :  { %v2137_v0 = vmul.f32 %v2953_v52, %v1860_v63  ;;  %v2955_v13 = vpop.eup %2954 }
 0x3c9   :  { %v2778_v34 = vpop.f32.mrf.mxu1  ;;  %v2957_v31 = vpop.eup %2956 }
 0x3ca   :  { %v2146_v49 = vmul.f32 %v2955_v13, %v2778_v34  ;;  %v2959_v17 = vpop.eup %2958 }
 0x3cb   :  { %v1967_v54 = vpop.f32.mrf.mxu1  ;;  %v2961_v7 = vpop.eup %2960 }
 0x3cc   :  { %v2786_v56 = vpop.f32.mrf.mxu0  ;;  %v2144_v14 = vmul.f32 %v2959_v17, %v1967_v54  ;;  %v2963_v55 = vpop.eup %2962 }
 0x3cd   :  { %v2150_v3 = vmul.f32 %v2945_v1, %v2786_v56  ;;  %v2779_v30 = vpop.f32.mrf.mxu1  ;;  %v2965_v46 = vpop.eup %2964 }
 0x3ce   :  { %v2022_v6 = vpop.f32.mrf.mxu0  ;;  %v2147_v19 = vmul.f32 %v2961_v7, %v2779_v30  ;;  %v2967_v45 = vpop.eup %2966 }
 0x3cf   :  { %2273 = vrot.lane.b32.xlu0 %v2150_v3, %s3020_s24  ;;  %v2148_v15 = vmul.f32 %v2951_v28, %v2022_v6  ;;  %v1970_v16 = vpop.f32.mrf.mxu1  ;;  %v2969_v51 = vpop.eup %2968 }
 0x3d0   :  { %v2787_v33 = vpop.f32.mrf.mxu0  ;;  %v2145_v48 = vmul.f32 %v2963_v55, %v1970_v16  ;;  %v2971_v22 = vpop.eup %2970 }
 0x3d1   :  { %v2151_v20 = vmul.f32 %v2949_v32, %v2787_v33 }
 0x3d2   :  { %v2025_v26 = vpop.f32.mrf.mxu0 }
 0x3d3   :  { %2206 = vrot.lane.b32.xlu0 %v2136_v50, %s3023_s26  ;;  %2275 = vrot.lane.b32.xlu1 %v2151_v20, %s3020_s24  ;;  %v2149_v40 = vmul.f32 %v2957_v31, %v2025_v26 }
 0x3d7   :  { %2269 = vrot.lane.b32.xlu0 %v2148_v15, %s3020_s24  ;;  %2208 = vrot.lane.b32.xlu1 %v2137_v0, %s3023_s26 }
 0x3d9   :  { %v2794_v44 = vpop.f32.mrf.mxu1 }
 0x3da   :  { %v2154_v21 = vmul.f32 %v2967_v45, %v2794_v44 }
 0x3db   :  { %2252 = vrot.lane.b32.xlu0 %v2146_v49, %s3024_s27  ;;  %2271 = vrot.lane.b32.xlu1 %v2149_v40, %s3020_s24  ;;  %v2077_v10 = vpop.f32.mrf.mxu1 }
 0x3dc   :  { %v2152_v4 = vmul.f32 %v2965_v46, %v2077_v10 }
 0x3dd   :  { %v2795_v9 = vpop.f32.mrf.mxu1 }
 0x3de   :  { %v2155_v12 = vmul.f32 %v2971_v22, %v2795_v9 }
 0x3df   :  { %2248 = vrot.lane.b32.xlu0 %v2144_v14, %s3024_s27  ;;  %2254 = vrot.lane.b32.xlu1 %v2147_v19, %s3024_s27  ;;  %v2080_v62 = vpop.f32.mrf.mxu1 }
 0x3e0   :  { %v2153_v42 = vmul.f32 %v2969_v51, %v2080_v62 }
 0x3e3   :  { %2250 = vrot.lane.b32.xlu1 %v2145_v48, %s3024_s27  ;;  %2290 = vrot.lane.b32.xlu0 %v2152_v4, %s3019_s20 }
 0x3e7   :  { %2294 = vrot.lane.b32.xlu0 %v2154_v21, %s3019_s20  ;;  %2292 = vrot.lane.b32.xlu1 %v2153_v42, %s3019_s20 }
 0x3eb   :  { %2296 = vrot.lane.b32.xlu1 %v2155_v12, %s3019_s20 }
 0x40d   :  { %v2169_v61 = vpop.permute.xlu1 %2168 }
 0x40e   :  { %2179 = vst.msk [vmem:[#allocation5 + $0x10] sm:$0xff] %vm2176_vm7, %v2169_v61 }
 0x411   :  { %v2165_v5 = vpop.permute.xlu1 %2164 }
 0x412   :  { %2177 = vst.msk [vmem:[#allocation5] sm:$0xff] %vm2176_vm7, %v2165_v5 }
 0x413   :  { %v2167_v36 = vpop.permute.xlu0 %2166 }
 0x414   :  { %2178 = vst.msk [vmem:[#allocation5 + $0x8] sm:$0xff] %vm2176_vm7, %v2167_v36 }
 0x415   :  { %v2171_v8 = vpop.permute.xlu1 %2170 }
 0x416   :  { %2180 = vst.msk [vmem:[#allocation5 + $0x18] sm:$0xff] %vm2176_vm7, %v2171_v8 }
 0x422   :  { %v2190_v11 = vpop.permute.xlu0 %2189 }
 0x423   :  { %2200 = vst.msk [vmem:[#allocation5 + $0x10] sm:$0xff] %vm2197_vm8, %v2190_v11 }
 0x426   :  { %v2192_v18 = vpop.permute.xlu1 %2191  ;;  %v2186_v25 = vpop.permute.xlu0 %2185 }
 0x427   :  { %2201 = vst.msk [vmem:[#allocation5 + $0x18] sm:$0xff] %vm2197_vm8, %v2192_v18  ;;  %2198 = vst.msk [vmem:[#allocation5] sm:$0xff] %vm2197_vm8, %v2186_v25 }
 0x42a   :  { %v2188_v35 = vpop.permute.xlu1 %2187  ;;  %v2232_v58 = vpop.permute.xlu0 %2231 }
 0x42b   :  { %2199 = vst.msk [vmem:[#allocation5 + $0x8] sm:$0xff] %vm2197_vm8, %v2188_v35 }
 0x42e   :  { %v2234_v27 = vpop.permute.xlu1 %2233  ;;  %v2228_v57 = vpop.permute.xlu0 %2227 }
 0x432   :  { %v2230_v60 = vpop.permute.xlu1 %2229  ;;  %v2211_v37 = vpop.permute.xlu0 %2210 }
 0x433   :  { %2221 = vst.msk [vmem:[#allocation5 + $0x10] sm:$0xff] %vm2218_vm9, %v2211_v37 }
 0x434   :  { %2242 = vst.msk [vmem:[#allocation5 + $0x10] sm:$0xff] %vm2239_vm10, %v2232_v58 }
 0x436   :  { %v2213_v41 = vpop.permute.xlu1 %2212 }
 0x437   :  { %2222 = vst.msk [vmem:[#allocation5 + $0x18] sm:$0xff] %vm2218_vm9, %v2213_v41 }
 0x438   :  { %2243 = vst.msk [vmem:[#allocation5 + $0x18] sm:$0xff] %vm2239_vm10, %v2234_v27 }
 0x441   :  { %v2274_v47 = vpop.permute.xlu0 %2273 }
 0x445   :  { %v2276_v2 = vpop.permute.xlu1 %2275  ;;  %v2207_v23 = vpop.permute.xlu0 %2206 }
 0x446   :  { %2219 = vst.msk [vmem:[#allocation5] sm:$0xff] %vm2218_vm9, %v2207_v23 }
 0x447   :  { %2240 = vst.msk [vmem:[#allocation5] sm:$0xff] %vm2239_vm10, %v2228_v57 }
 0x449   :  { %v2209_v43 = vpop.permute.xlu1 %2208  ;;  %v2270_v29 = vpop.permute.xlu0 %2269 }
 0x44a   :  { %2220 = vst.msk [vmem:[#allocation5 + $0x8] sm:$0xff] %vm2218_vm9, %v2209_v43 }
 0x44b   :  { %2241 = vst.msk [vmem:[#allocation5 + $0x8] sm:$0xff] %vm2239_vm10, %v2230_v60 }
 0x44d   :  { %v2272_v53 = vpop.permute.xlu1 %2271  ;;  %v2253_v24 = vpop.permute.xlu0 %2252 }
 0x44e   :  { %2263 = vst.msk [vmem:[#allocation5 + $0x10] sm:$0xff] %vm2260_vm11, %v2253_v24 }
 0x44f   :  { %2284 = vst.msk [vmem:[#allocation5 + $0x10] sm:$0xff] %vm2281_vm12, %v2274_v47 }
 0x451   :  { %v2255_v38 = vpop.permute.xlu1 %2254  ;;  %v2249_v59 = vpop.permute.xlu0 %2248 }
 0x452   :  { %2264 = vst.msk [vmem:[#allocation5 + $0x18] sm:$0xff] %vm2260_vm11, %v2255_v38  ;;  %2261 = vst.msk [vmem:[#allocation5] sm:$0xff] %vm2260_vm11, %v2249_v59 }
 0x453   :  { %2282 = vst.msk [vmem:[#allocation5] sm:$0xff] %vm2281_vm12, %v2270_v29  ;;  %2285 = vst.msk [vmem:[#allocation5 + $0x18] sm:$0xff] %vm2281_vm12, %v2276_v2 }
 0x455   :  { %v2251_v63 = vpop.permute.xlu1 %2250  ;;  %v2291_v34 = vpop.permute.xlu0 %2290 }
 0x456   :  { %2262 = vst.msk [vmem:[#allocation5 + $0x8] sm:$0xff] %vm2260_vm11, %v2251_v63 }
 0x457   :  { %2303 = vst.msk [vmem:[#allocation5] sm:$0xff] %vm2302_vm13, %v2291_v34 }
 0x458   :  { %2283 = vst.msk [vmem:[#allocation5 + $0x8] sm:$0xff] %vm2281_vm12, %v2272_v53 }
 0x459   :  { %v2295_v1 = vpop.permute.xlu0 %2294  ;;  %v2293_v56 = vpop.permute.xlu1 %2292 }
 0x45a   :  { %2305 = vst.msk [vmem:[#allocation5 + $0x10] sm:$0xff] %vm2302_vm13, %v2295_v1  ;;  %2304 = vst.msk [vmem:[#allocation5 + $0x8] sm:$0xff] %vm2302_vm13, %v2293_v56 }
 0x45d   :  { %v2297_v3 = vpop.permute.xlu1 %2296 }
 0x45e   :  { %2306 = vst.msk [vmem:[#allocation5 + $0x18] sm:$0xff] %vm2302_vm13, %v2297_v3 }
 0x45f   :  { %3003 = shalt.err (!%p3000_p9)
}
 0x460   :  { %s3026_s3 = smov 128   ;;  %s3027_s4 = smov 8  }
 0x461   :  { %2318 = dma.vmem_to_hbm [thread:$0]  %s2313_s29, 512, %s3701_s2, [#allocation4], %s3026_s3, %s3026_s3, %s3027_s4  }
 0x462   :  { %3014 = dma.done.wait [#allocation4], 512  }
 0x463   :  { %3015 = vsyncadd [#allocation4], 4294966784 }
 0x464   :  { %2322 = vsyncpa [#allocation3], 1 }
 0x465   :  { %2323 = vsyncpa [#allocation4], 1 }

</bundles_post_ra>
